<compile_context>
chip_gen: v5e
topology: v5e:2x2
jax: 0.10.0
libtpu: 0.0.40
codegen_flags: <defaults>
</compile_context>

<pallas_src>
import jax
import jax.numpy as jnp
from jax.experimental import pallas as pl
from jax.experimental.pallas import tpu as pltpu

IN_DIM = 28 * 28        # 784
HIDDEN = 500
HIDDEN_PAD = 512        # lane-aligned hidden width (multiple of 128)
NUM_CLASSES = 10
OUT_PAD = 128           # lane-aligned logits width
BN_EPS = 1e-5


def _bn_mlp_kernel(x_ref, w1_ref, b1_ref, g_ref, beta_ref,
                   w2_ref, b2_ref, w3_ref, b3_ref, o_ref):
    x = x_ref[...]                                            # (B, 784) bf16

    # Linear 1: 784 -> 512 (padded).  bf16 x bf16 -> f32 accumulate.
    h = jnp.dot(x, w1_ref[...], preferred_element_type=jnp.float32)
    h = h + b1_ref[...]                                       # (B, 512) f32

    # BatchNorm1d, training mode (batch mean, biased variance), affine folded
    # into scale/shift:  y = h * scale + shift.
    mean = jnp.mean(h, axis=0, keepdims=True)                 # (1, 512)
    var = jnp.mean((h - mean) * (h - mean), axis=0, keepdims=True)
    scale = g_ref[...] * jax.lax.rsqrt(var + BN_EPS)          # gamma pad = 0
    shift = beta_ref[...] - mean * scale
    h = h * scale + shift

    # ReLU
    h = jnp.maximum(h, 0.0)

    # Linear 2: 512 -> 512, ReLU
    h = jnp.dot(h.astype(jnp.bfloat16), w2_ref[...],
                preferred_element_type=jnp.float32) + b2_ref[...]
    h = jnp.maximum(h, 0.0)

    # Linear 3: 512 -> 128 (padded logits); lane-dense output store.
    out = jnp.dot(h.astype(jnp.bfloat16), w3_ref[...],
                  preferred_element_type=jnp.float32) + b3_ref[...]
    o_ref[...] = out.astype(o_ref.dtype)


def bn_mlp_forward(x_nchw, params):
    """x_nchw: (B, 1, 28, 28) float32. Returns logits (B, 10) float32."""
    B = x_nchw.shape[0]
    x_flat = x_nchw.reshape(B, -1).astype(jnp.bfloat16)       # nn.Flatten + bf16
    w1, b1, g, beta, w2, b2, w3, b3 = params

    flops = 2 * B * (IN_DIM * HIDDEN_PAD
                     + HIDDEN_PAD * HIDDEN_PAD
                     + HIDDEN_PAD * OUT_PAD)
    bytes_accessed = (
        x_flat.size * 2                                        # bf16 input
        + (w1.size + w2.size + w3.size) * 2                    # bf16 weights
        + (b1.size + g.size + beta.size + b2.size + b3.size) * 4
        + B * OUT_PAD * 4)                                     # f32 output

    vmem_spec = pl.BlockSpec(memory_space=pltpu.MemorySpace.VMEM)
    out_padded = pl.pallas_call(
        _bn_mlp_kernel,
        out_shape=jax.ShapeDtypeStruct((B, OUT_PAD), jnp.float32),
        in_specs=[vmem_spec] * 9,
        out_specs=vmem_spec,
        cost_estimate=pl.CostEstimate(
            flops=flops,
            transcendentals=HIDDEN_PAD,
            bytes_accessed=bytes_accessed),
    )(x_flat, w1, b1, g, beta, w2, b2, w3, b3)
    return out_padded[:, :NUM_CLASSES]


def init_params(key):
    """Deterministic synthetic init matching torch layer shapes.

    Weights are (in_features, out_features), zero-padded to lane-aligned
    sizes and cast to bf16.  Biases / BN params are f32, zero-padded; gamma's
    padded columns are 0 so padded features stay exactly 0 through BN.
    """
    def linear(key, fan_in, fan_out, fan_in_pad, fan_out_pad):
        kw, kb = jax.random.split(key)
        bound = 1.0 / jnp.sqrt(fan_in)
        w = jax.random.uniform(kw, (fan_in, fan_out), jnp.float32, -bound, bound)
        b = jax.random.uniform(kb, (1, fan_out), jnp.float32, -bound, bound)
        w_pad = jnp.zeros((fan_in_pad, fan_out_pad), jnp.float32)
        w_pad = w_pad.at[:fan_in, :fan_out].set(w)
        b_pad = jnp.zeros((1, fan_out_pad), jnp.float32).at[:, :fan_out].set(b)
        return w_pad.astype(jnp.bfloat16), b_pad

    k1, k2, k3 = jax.random.split(key, 3)
    w1, b1 = linear(k1, IN_DIM, HIDDEN, IN_DIM, HIDDEN_PAD)
    w2, b2 = linear(k2, HIDDEN, HIDDEN, HIDDEN_PAD, HIDDEN_PAD)
    w3, b3 = linear(k3, HIDDEN, NUM_CLASSES, HIDDEN_PAD, OUT_PAD)
    gamma = jnp.zeros((1, HIDDEN_PAD), jnp.float32).at[:, :HIDDEN].set(1.0)
    beta = jnp.zeros((1, HIDDEN_PAD), jnp.float32)
    return (w1, b1, gamma, beta, w2, b2, w3, b3)


def _reference(x_nchw, params):
    """Pure-JAX reference of the same (bf16-matmul) forward pass."""
    w1, b1, g, beta, w2, b2, w3, b3 = params
    x = x_nchw.reshape(x_nchw.shape[0], -1).astype(jnp.bfloat16)
    h = jnp.dot(x, w1, preferred_element_type=jnp.float32) + b1
    mean = jnp.mean(h, axis=0, keepdims=True)
    var = jnp.mean((h - mean) ** 2, axis=0, keepdims=True)
    h = (h - mean) * jax.lax.rsqrt(var + BN_EPS) * g + beta
    h = jnp.maximum(h, 0.0)
    h = jnp.maximum(
        jnp.dot(h.astype(jnp.bfloat16), w2, preferred_element_type=jnp.float32) + b2,
        0.0)
    out = jnp.dot(h.astype(jnp.bfloat16), w3,
                  preferred_element_type=jnp.float32) + b3
    return out[:, :NUM_CLASSES]


if __name__ == "__main__":
    key = jax.random.PRNGKey(0)
    kx, kp = jax.random.split(key)

    B = 8
    x = jax.random.normal(kx, (B, 1, 28, 28), jnp.float32)    # MNIST-shaped input
    params = init_params(kp)

    out = bn_mlp_forward(x, params)
    out = jax.block_until_ready(out)

    ref = _reference(x, params)
    assert out.shape == (B, NUM_CLASSES)
    assert jnp.allclose(out, ref, atol=2e-2, rtol=2e-2), "mismatch vs reference"

    print("KERNEL_OK")
</pallas_src>

<mosaic_0001>
module attributes {stable_mosaic.version = 11 : i64} {
  func.func @_bn_mlp_kernel(%arg0: memref<8x784xbf16, #tpu.memory_space<vmem>>, %arg1: memref<784x512xbf16, #tpu.memory_space<vmem>>, %arg2: memref<1x512xf32, #tpu.memory_space<vmem>>, %arg3: memref<1x512xf32, #tpu.memory_space<vmem>>, %arg4: memref<1x512xf32, #tpu.memory_space<vmem>>, %arg5: memref<512x512xbf16, #tpu.memory_space<vmem>>, %arg6: memref<1x512xf32, #tpu.memory_space<vmem>>, %arg7: memref<512x128xbf16, #tpu.memory_space<vmem>>, %arg8: memref<1x128xf32, #tpu.memory_space<vmem>>, %arg9: memref<8x128xf32, #tpu.memory_space<vmem>>) attributes {dimension_semantics = [], scalar_prefetch = 0 : i64, scratch_operands = 0 : i64, tpu.core_type = #tpu.core_type<tc>} {
    %c0 = arith.constant 0 : index
    %c0_0 = arith.constant 0 : index
    %0 = vector.load %arg0[%c0, %c0_0] : memref<8x784xbf16, #tpu.memory_space<vmem>>, vector<8x784xbf16>
    %c0_1 = arith.constant 0 : index
    %c0_2 = arith.constant 0 : index
    %1 = vector.load %arg1[%c0_1, %c0_2] : memref<784x512xbf16, #tpu.memory_space<vmem>>, vector<784x512xbf16>
    %cst = arith.constant dense<0.000000e+00> : vector<8x512xf32>
    %2 = tpu.matmul %0, %1, %cst {dimension_numbers = #tpu.dot_dimension_numbers<[1], [0], [0], [1], [0, 0, 1, 1], [], []>} : vector<8x784xbf16>, vector<784x512xbf16>, vector<8x512xf32> -> vector<8x512xf32>
    %c0_3 = arith.constant 0 : index
    %c0_4 = arith.constant 0 : index
    %3 = vector.load %arg2[%c0_3, %c0_4] : memref<1x512xf32, #tpu.memory_space<vmem>>, vector<1x512xf32>
    %4 = vector.broadcast %3 : vector<1x512xf32> to vector<8x512xf32>
    %5 = arith.addf %2, %4 : vector<8x512xf32>
    %cst_5 = arith.constant dense<0.000000e+00> : vector<512xf32>
    %6 = vector.multi_reduction <add>, %5, %cst_5 [0] : vector<8x512xf32> to vector<512xf32>
    %7 = vector.shape_cast %6 : vector<512xf32> to vector<1x512xf32>
    %cst_6 = arith.constant 8.000000e+00 : f32
    %8 = vector.broadcast %cst_6 : f32 to vector<1x512xf32>
    %9 = arith.divf %7, %8 : vector<1x512xf32>
    %10 = vector.broadcast %9 : vector<1x512xf32> to vector<8x512xf32>
    %11 = arith.subf %5, %10 : vector<8x512xf32>
    %12 = vector.broadcast %9 : vector<1x512xf32> to vector<8x512xf32>
    %13 = arith.subf %5, %12 : vector<8x512xf32>
    %14 = arith.mulf %11, %13 : vector<8x512xf32>
    %cst_7 = arith.constant dense<0.000000e+00> : vector<512xf32>
    %15 = vector.multi_reduction <add>, %14, %cst_7 [0] : vector<8x512xf32> to vector<512xf32>
    %16 = vector.shape_cast %15 : vector<512xf32> to vector<1x512xf32>
    %cst_8 = arith.constant 8.000000e+00 : f32
    %17 = vector.broadcast %cst_8 : f32 to vector<1x512xf32>
    %18 = arith.divf %16, %17 : vector<1x512xf32>
    %c0_9 = arith.constant 0 : index
    %c0_10 = arith.constant 0 : index
    %19 = vector.load %arg3[%c0_9, %c0_10] : memref<1x512xf32, #tpu.memory_space<vmem>>, vector<1x512xf32>
    %cst_11 = arith.constant 9.99999974E-6 : f32
    %20 = vector.broadcast %cst_11 : f32 to vector<1x512xf32>
    %21 = arith.addf %18, %20 : vector<1x512xf32>
    %22 = math.rsqrt %21 : vector<1x512xf32>
    %23 = arith.mulf %19, %22 : vector<1x512xf32>
    %c0_12 = arith.constant 0 : index
    %c0_13 = arith.constant 0 : index
    %24 = vector.load %arg4[%c0_12, %c0_13] : memref<1x512xf32, #tpu.memory_space<vmem>>, vector<1x512xf32>
    %25 = arith.mulf %9, %23 : vector<1x512xf32>
    %26 = arith.subf %24, %25 : vector<1x512xf32>
    %27 = vector.broadcast %23 : vector<1x512xf32> to vector<8x512xf32>
    %28 = arith.mulf %5, %27 : vector<8x512xf32>
    %29 = vector.broadcast %26 : vector<1x512xf32> to vector<8x512xf32>
    %30 = arith.addf %28, %29 : vector<8x512xf32>
    %cst_14 = arith.constant 0.000000e+00 : f32
    %31 = vector.broadcast %cst_14 : f32 to vector<8x512xf32>
    %32 = arith.maximumf %30, %31 : vector<8x512xf32>
    %33 = arith.truncf %32 : vector<8x512xf32> to vector<8x512xbf16>
    %c0_15 = arith.constant 0 : index
    %c0_16 = arith.constant 0 : index
    %34 = vector.load %arg5[%c0_15, %c0_16] : memref<512x512xbf16, #tpu.memory_space<vmem>>, vector<512x512xbf16>
    %cst_17 = arith.constant dense<0.000000e+00> : vector<8x512xf32>
    %35 = tpu.matmul %33, %34, %cst_17 {dimension_numbers = #tpu.dot_dimension_numbers<[1], [0], [0], [1], [0, 0, 1, 1], [], []>} : vector<8x512xbf16>, vector<512x512xbf16>, vector<8x512xf32> -> vector<8x512xf32>
    %c0_18 = arith.constant 0 : index
    %c0_19 = arith.constant 0 : index
    %36 = vector.load %arg6[%c0_18, %c0_19] : memref<1x512xf32, #tpu.memory_space<vmem>>, vector<1x512xf32>
    %37 = vector.broadcast %36 : vector<1x512xf32> to vector<8x512xf32>
    %38 = arith.addf %35, %37 : vector<8x512xf32>
    %cst_20 = arith.constant 0.000000e+00 : f32
    %39 = vector.broadcast %cst_20 : f32 to vector<8x512xf32>
    %40 = arith.maximumf %38, %39 : vector<8x512xf32>
    %41 = arith.truncf %40 : vector<8x512xf32> to vector<8x512xbf16>
    %c0_21 = arith.constant 0 : index
    %c0_22 = arith.constant 0 : index
    %42 = vector.load %arg7[%c0_21, %c0_22] : memref<512x128xbf16, #tpu.memory_space<vmem>>, vector<512x128xbf16>
    %cst_23 = arith.constant dense<0.000000e+00> : vector<8x128xf32>
    %43 = tpu.matmul %41, %42, %cst_23 {dimension_numbers = #tpu.dot_dimension_numbers<[1], [0], [0], [1], [0, 0, 1, 1], [], []>} : vector<8x512xbf16>, vector<512x128xbf16>, vector<8x128xf32> -> vector<8x128xf32>
    %c0_24 = arith.constant 0 : index
    %c0_25 = arith.constant 0 : index
    %44 = vector.load %arg8[%c0_24, %c0_25] : memref<1x128xf32, #tpu.memory_space<vmem>>, vector<1x128xf32>
    %45 = vector.broadcast %44 : vector<1x128xf32> to vector<8x128xf32>
    %46 = arith.addf %43, %45 : vector<8x128xf32>
    %c0_26 = arith.constant 0 : index
    %c0_27 = arith.constant 0 : index
    %47 = vector.load %arg9[%c0_26, %c0_27] : memref<8x128xf32, #tpu.memory_space<vmem>>, vector<8x128xf32>
    tpu.vector_store %arg9[%c0_26, %c0_27], %46 {strides = array<i32>} : memref<8x128xf32, #tpu.memory_space<vmem>>, vector<8x128xf32>,
    return
  }
}

</mosaic_0001>

<bundles_post_ra>
// kernel: tpu_custom_call.1
= control target key start
LH: loop header
LB: loop body
LE: loop exit
PB: predicated region body
PF: predicated region fallthrough
CT: control target
= control target key end

     0   :  { %14 = vsyncpa [#allocation3], 0  ;;  %s5508_s0 = inlined_call_operand.hbm [shape: bf16[8,784], index: 0, kind: input, shape index: {}]   ;;  %s5509_s1 = inlined_call_operand.hbm [shape: bf16[784,512], index: 1, kind: input, shape index: {}]   ;;  %s5510_s2 = inlined_call_operand.hbm [shape: f32[1,512], index: 2, kind: input, shape index: {}]   ;;  %s5511_s3 = inlined_call_operand.hbm [shape: f32[1,512], index: 3, kind: input, shape index: {}]   ;;  %s5512_s4 = inlined_call_operand.hbm [shape: f32[1,512], index: 4, kind: input, shape index: {}]   ;;  %s5513_s5 = inlined_call_operand.hbm [shape: bf16[512,512], index: 5, kind: input, shape index: {}]   ;;  %s5514_s6 = inlined_call_operand.vmem [shape: f32[1,512], index: 6, kind: input, shape index: {}]   ;;  %s5515_s7 = inlined_call_operand.hbm [shape: bf16[512,128], index: 7, kind: input, shape index: {}]   ;;  %s5516_s8 = inlined_call_operand.vmem [shape: f32[1,128], index: 8, kind: input, shape index: {}]   ;;  %s5517_s9 = inlined_call_operand.hbm [shape: f32[8,128], index: 9, kind: output, shape index: {}]  }
   0x1   :  { %15 = vsyncpa [#allocation6], 0 }
   0x2   :  { %16 = vsyncpa [#allocation9], 0 }
   0x3   :  { %17 = vsyncpa [#allocation12], 0  ;;  %s34_s11 = sshll.u32 %s5509_s1, 4  ;;  %s35_s11 = int_to_ptr.hbm [resolvable:$true] %s34_s11 }
   0x4   :  { %18 = vsyncpa [#allocation4], 0  ;;  %s5236_s12 = smov [#allocation5]   ;;  %s59_s16 = sshll.u32 %s5511_s3, 4  ;;  %s60_s16 = int_to_ptr.hbm [resolvable:$true] %s59_s16 }
   0x5   :  { %s36_s13 = sshll.u32 %s5236_s12, 4  ;;  %s5237_s17 = smov 256   ;;  %s37_s13 = int_to_ptr.vmem [resolvable:$true] %s36_s13 }
   0x6   :  { %s5238_s18 = smov 16   ;;  %s5239_s19 = smov [#allocation8]  }
   0x7   :  { %42 = dma.hbm_to_vmem [thread:$0]  %s35_s11, 25088, %s37_s13, [#allocation6], %s5237_s17, %s5237_s17, %s5238_s18  }
   0x8   :  { %s61_s20 = sshll.u32 %s5239_s19, 4  ;;  %s80_s23 = sshll.u32 %s5513_s5, 4  ;;  %s62_s20 = int_to_ptr.vmem [resolvable:$true] %s61_s20  ;;  %s81_s23 = int_to_ptr.hbm [resolvable:$true] %s80_s23 }
   0x9   :  { %64 = dma.hbm_to_vmem [thread:$0]  %s60_s16, 64, %s62_s20, [#allocation9]  }
   0xa   :  { %s24_s25 = sshll.u32 %s5508_s0, 4  ;;  %s5240_s26 = smov [#allocation11]   ;;  %s25_s25 = int_to_ptr.hbm [resolvable:$true] %s24_s25 }
   0xb   :  { %s82_s27 = sshll.u32 %s5240_s26, 4  ;;  %s5241_s3 = smov [#allocation2]   ;;  %s83_s27 = int_to_ptr.vmem [resolvable:$true] %s82_s27 }
   0xc   :  { %88 = dma.hbm_to_vmem [thread:$0]  %s81_s23, 16384, %s83_s27, [#allocation12], %s5237_s17, %s5237_s17, %s5238_s18  }
   0xd   :  { %s26_s28 = sshll.u32 %s5241_s3, 4  ;;  %s48_s10 = sshll.u32 %s5510_s2, 4  ;;  %s27_s28 = int_to_ptr.vmem [resolvable:$true] %s26_s28  ;;  %s49_s10 = int_to_ptr.hbm [resolvable:$true] %s48_s10 }
   0xe   :  { %29 = dma.hbm_to_vmem [thread:$0]  %s25_s25, 448, %s27_s28, [#allocation3]  }
   0xf   :  { %s70_s12 = sshll.u32 %s5512_s4, 4  ;;  %s5242_s13 = smov [#allocation7]   ;;  %s71_s12 = int_to_ptr.hbm [resolvable:$true] %s70_s12 }
  0x10   :  { %s50_s0 = sshll.u32 %s5242_s13, 4  ;;  %s5243_s14 = smov [#allocation10]   ;;  %s51_s0 = int_to_ptr.vmem [resolvable:$true] %s50_s0 }
  0x11   :  { %53 = dma.hbm_to_vmem [thread:$0]  %s49_s10, 64, %s51_s0, [#allocation6]  }
  0x12   :  { %s72_s15 = sshll.u32 %s5243_s14, 4  ;;  %s95_s18 = sshll.u32 %s5515_s7, 4  ;;  %s73_s15 = int_to_ptr.vmem [resolvable:$true] %s72_s15  ;;  %s96_s18 = int_to_ptr.hbm [resolvable:$true] %s95_s18 }
  0x13   :  { %75 = dma.hbm_to_vmem [thread:$0]  %s71_s12, 64, %s73_s15, [#allocation9]  }
  0x14   :  { %s5244_s2 = smov [#allocation13]   ;;  %s5245_s20 = smov 64  }
  0x15   :  { %s97_s19 = sshll.u32 %s5244_s2, 4  ;;  %s5246_s21 = smov 4   ;;  %s98_s19 = int_to_ptr.vmem [resolvable:$true] %s97_s19 }
  0x16   :  { %103 = dma.hbm_to_vmem [thread:$0]  %s96_s18, 4096, %s98_s19, [#allocation12], %s5245_s20, %s5245_s20, %s5246_s21  }
  0x17   :  { %5226 = dma.done.wait [#allocation3], 448  }
  0x18   :  { %5227 = vsyncadd [#allocation3], 4294966848 }
  0x19   :  { %5228 = dma.done.wait [#allocation6], 25152  }
  0x1a   :  { %5229 = vsyncadd [#allocation6], 4294942144 }
  0x1b   :  { %5230 = dma.done.wait [#allocation9], 128  }
  0x1c   :  { %5231 = vsyncadd [#allocation9], 4294967168 }
  0x1d   :  { %5232 = dma.done.wait [#allocation12], 20480  }
  0x1e   :  { %5233 = vsyncadd [#allocation12], 4294946816  ;;  %v3340_v0 = vld [vmem:[#allocation5 + $0xe0] sm:$0xf]  ;;  %v4684_v1 = vld [vmem:[#allocation5 + $0xec] sm:$0xf0] }
  0x1f   :  { %v3468_v2 = vld [vmem:[#allocation5 + $0x1e0] sm:$0xf]  ;;  %v3341_v3 = vor.u32 %v4684_v1, %v3340_v0  ;;  %v4716_v4 = vld [vmem:[#allocation5 + $0x1ec] sm:$0xf0]  ;;  %vm1349_vm0 = vcmask 130048   ;;  %vm1840_vm13 = vcmask 1040384  }
  0x20   :  { %v3596_v5 = vld [vmem:[#allocation5 + $0x2e0] sm:$0xf]  ;;  %v4748_v6 = vld [vmem:[#allocation5 + $0x2ec] sm:$0xf0]  ;;  %v3469_v7 = vor.u32 %v4716_v4, %v3468_v2  ;;  %vm1842_vm14 = vcmask 1042434   ;;  %s5248_s23 = smov [#allocation14]  }
  0x21   :  { %v3597_v8 = vor.u32 %v4748_v6, %v3596_v5  ;;  %v3724_v9 = vld [vmem:[#allocation5 + $0x3e0] sm:$0xf]  ;;  %v4780_v10 = vld [vmem:[#allocation5 + $0x3ec] sm:$0xf0]  ;;  %1353 = vmatpush.bf16.msra.mxu0 %v3341_v3  ;;  %s3211_s1 = sshll.u32 %s5248_s23, 4  ;;  %s3213_s26 = sshll.u32 %s5517_s9, 4  ;;  %s3212_s1 = int_to_ptr.vmem [resolvable:$true] %s3211_s1  ;;  %s3214_s26 = int_to_ptr.hbm [resolvable:$true] %s3213_s26 }
  0x22   :  { %v3324_v11 = vld [vmem:[#allocation5 + $0xc0] sm:$0xf]  ;;  %v3725_v12 = vor.u32 %v4780_v10, %v3724_v9  ;;  %v4680_v13 = vld [vmem:[#allocation5 + $0xcc] sm:$0xf0]  ;;  %1366 = vmatpush.bf16.msra.mxu1 %v3469_v7 }
  0x23   :  { %v3452_v14 = vld [vmem:[#allocation5 + $0x1c0] sm:$0xf]  ;;  %v4712_v15 = vld [vmem:[#allocation5 + $0x1cc] sm:$0xf0]  ;;  %1379 = vmatpush.bf16.msra.mxu2 %v3597_v8  ;;  %v3325_v16 = vor.u32 %v4680_v13, %v3324_v11 }
  0x24   :  { %v3453_v17 = vor.u32 %v4712_v15, %v3452_v14  ;;  %v3580_v18 = vld [vmem:[#allocation5 + $0x2c0] sm:$0xf]  ;;  %v4744_v19 = vld [vmem:[#allocation5 + $0x2cc] sm:$0xf0]  ;;  %1392 = vmatpush.bf16.msra.mxu3 %v3725_v12 }
  0x25   :  { %v3708_v20 = vld [vmem:[#allocation5 + $0x3c0] sm:$0xf]  ;;  %v3581_v21 = vor.u32 %v4744_v19, %v3580_v18  ;;  %v4776_v22 = vld [vmem:[#allocation5 + $0x3cc] sm:$0xf0]  ;;  %1354 = vmatpush.bf16.msra.mxu0 %v3325_v16 }
  0x26   :  { %v3308_v23 = vld [vmem:[#allocation5 + $0xa0] sm:$0xf]  ;;  %v4676_v24 = vld [vmem:[#allocation5 + $0xac] sm:$0xf0]  ;;  %v3709_v25 = vor.u32 %v4776_v22, %v3708_v20  ;;  %1367 = vmatpush.bf16.msra.mxu1 %v3453_v17 }
  0x27   :  { %v3436_v26 = vld [vmem:[#allocation5 + $0x1a0] sm:$0xf]  ;;  %v4708_v27 = vld [vmem:[#allocation5 + $0x1ac] sm:$0xf0]  ;;  %v3309_v29 = vor.u32 %v4676_v24, %v3308_v23  ;;  %1380 = vmatpush.bf16.msra.mxu2 %v3581_v21 }
  0x28   :  { %v3564_v28 = vld [vmem:[#allocation5 + $0x2a0] sm:$0xf]  ;;  %v4740_v30 = vld [vmem:[#allocation5 + $0x2ac] sm:$0xf0]  ;;  %v3437_v33 = vor.u32 %v4708_v27, %v3436_v26  ;;  %1393 = vmatpush.bf16.msra.mxu3 %v3709_v25 }
  0x29   :  { %v3692_v31 = vld [vmem:[#allocation5 + $0x3a0] sm:$0xf]  ;;  %v4772_v32 = vld [vmem:[#allocation5 + $0x3ac] sm:$0xf0]  ;;  %v3565_v34 = vor.u32 %v4740_v30, %v3564_v28  ;;  %1355 = vmatpush.bf16.msra.mxu0 %v3309_v29 }
  0x2a   :  { %v3292_v35 = vld [vmem:[#allocation5 + $0x80] sm:$0xf]  ;;  %v4672_v36 = vld [vmem:[#allocation5 + $0x8c] sm:$0xf0]  ;;  %v3693_v38 = vor.u32 %v4772_v32, %v3692_v31  ;;  %1368 = vmatpush.bf16.msra.mxu1 %v3437_v33 }
  0x2b   :  { %v3420_v37 = vld [vmem:[#allocation5 + $0x180] sm:$0xf]  ;;  %v4704_v39 = vld [vmem:[#allocation5 + $0x18c] sm:$0xf0]  ;;  %v3293_v44 = vor.u32 %v4672_v36, %v3292_v35  ;;  %1381 = vmatpush.bf16.msra.mxu2 %v3565_v34  ;;  %v4682_v34 = vld [vmem:[#allocation5 + $0xe4] sm:$0xf] }
  0x2c   :  { %v3548_v40 = vld [vmem:[#allocation5 + $0x280] sm:$0xf]  ;;  %v4736_v41 = vld [vmem:[#allocation5 + $0x28c] sm:$0xf0]  ;;  %v3421_v45 = vor.u32 %v4704_v39, %v3420_v37  ;;  %1394 = vmatpush.bf16.msra.mxu3 %v3693_v38  ;;  %v3342_v35 = vld [vmem:[#allocation5 + $0xf0] sm:$0xf0] }
  0x2d   :  { %v3676_v42 = vld [vmem:[#allocation5 + $0x380] sm:$0xf]  ;;  %v4768_v43 = vld [vmem:[#allocation5 + $0x38c] sm:$0xf0]  ;;  %v3549_v46 = vor.u32 %v4736_v41, %v3548_v40  ;;  %1356 = vmatpush.bf16.msra.mxu0 %v3293_v44  ;;  %v135_v37 = vld [vmem:[#allocation2] sm:$0xff] }
  0x2e   :  { %v3276_v47 = vld [vmem:[#allocation5 + $0x60] sm:$0xf]  ;;  %v4668_v48 = vld [vmem:[#allocation5 + $0x6c] sm:$0xf0]  ;;  %v3677_v50 = vor.u32 %v4768_v43, %v3676_v42  ;;  %1369 = vmatpush.bf16.msra.mxu1 %v3421_v45  ;;  %v349_v41 = vunpack.c.l.b16 %v135_v37 }
  0x2f   :  { %v3404_v49 = vld [vmem:[#allocation5 + $0x160] sm:$0xf]  ;;  %v4700_v51 = vld [vmem:[#allocation5 + $0x16c] sm:$0xf0]  ;;  %v3277_v56 = vor.u32 %v4668_v48, %v3276_v47  ;;  %1382 = vmatpush.bf16.msra.mxu2 %v3549_v46  ;;  %v4714_v46 = vld [vmem:[#allocation5 + $0x1e4] sm:$0xf] }
  0x30   :  { %v3532_v52 = vld [vmem:[#allocation5 + $0x260] sm:$0xf]  ;;  %v4732_v53 = vld [vmem:[#allocation5 + $0x26c] sm:$0xf0]  ;;  %v3405_v57 = vor.u32 %v4700_v51, %v3404_v49  ;;  %1395 = vmatpush.bf16.msra.mxu3 %v3677_v50  ;;  %v3470_v47 = vld [vmem:[#allocation5 + $0x1f0] sm:$0xf0]  ;;  %v3345_v49 = vor.u32 %v4682_v34, %v3342_v35 }
  0x31   :  { %v3660_v54 = vld [vmem:[#allocation5 + $0x360] sm:$0xf]  ;;  %v4764_v55 = vld [vmem:[#allocation5 + $0x36c] sm:$0xf0]  ;;  %v3533_v58 = vor.u32 %v4732_v53, %v3532_v52  ;;  %1357 = vmatpush.bf16.msra.mxu0 %v3277_v56  ;;  %v3326_v56 = vld [vmem:[#allocation5 + $0xd0] sm:$0xf0] }
  0x32   :  { %v3260_v59 = vld [vmem:[#allocation5 + $0x40] sm:$0xf]  ;;  %v4664_v60 = vld [vmem:[#allocation5 + $0x4c] sm:$0xf0]  ;;  %v3661_v62 = vor.u32 %v4764_v55, %v3660_v54  ;;  %1370 = vmatpush.bf16.msra.mxu1 %v3405_v57  ;;  %v4678_v55 = vld [vmem:[#allocation5 + $0xc4] sm:$0xf]  ;;  %v5322_v57 = vpack.c.b16 %v349_v41, %v349_v41 }
  0x33   :  { %v3388_v61 = vld [vmem:[#allocation5 + $0x140] sm:$0xf]  ;;  %v4696_v63 = vld [vmem:[#allocation5 + $0x14c] sm:$0xf0]  ;;  %v3261_v4 = vor.u32 %v4664_v60, %v3260_v59  ;;  %1383 = vmatpush.bf16.msra.mxu2 %v3533_v58  ;;  %v350_v58 = vunpack.c.h.b16 %v135_v37  ;;  %v3278_v34 = vld [vmem:[#allocation5 + $0x70] sm:$0xf0] }
  0x34   :  { %v3516_v0 = vld [vmem:[#allocation5 + $0x240] sm:$0xf]  ;;  %v4728_v1 = vld [vmem:[#allocation5 + $0x24c] sm:$0xf0]  ;;  %v3389_v5 = vor.u32 %v4696_v63, %v3388_v61  ;;  %1396 = vmatpush.bf16.msra.mxu3 %v3661_v62  ;;  %v3473_v61 = vor.u32 %v4714_v46, %v3470_v47  ;;  %v4710_v63 = vld [vmem:[#allocation5 + $0x1c4] sm:$0xf] }
  0x35   :  { %v3644_v2 = vld [vmem:[#allocation5 + $0x340] sm:$0xf]  ;;  %v4760_v3 = vld [vmem:[#allocation5 + $0x34c] sm:$0xf0]  ;;  %v3517_v6 = vor.u32 %v4728_v1, %v3516_v0  ;;  %1358 = vmatpush.bf16.msra.mxu0 %v3261_v4  ;;  %v3454_v0 = vld [vmem:[#allocation5 + $0x1d0] sm:$0xf0] }
  0x36   :  { %v3244_v7 = vld [vmem:[#allocation5 + $0x20] sm:$0xf]  ;;  %v4660_v8 = vld [vmem:[#allocation5 + $0x2c] sm:$0xf0]  ;;  %v3645_v10 = vor.u32 %v4760_v3, %v3644_v2  ;;  %1371 = vmatpush.bf16.msra.mxu1 %v3389_v5  ;;  %v3329_v2 = vor.u32 %v4678_v55, %v3326_v56  ;;  %v4662_v46 = vld [vmem:[#allocation5 + $0x44] sm:$0xf] }
  0x37   :  { %v3372_v9 = vld [vmem:[#allocation5 + $0x120] sm:$0xf]  ;;  %v4692_v11 = vld [vmem:[#allocation5 + $0x12c] sm:$0xf0]  ;;  %v3245_v17 = vor.u32 %v4660_v8, %v3244_v7  ;;  %1384 = vmatpush.bf16.msra.mxu2 %v3517_v6  ;;  %v4674_v7 = vld [vmem:[#allocation5 + $0xa4] sm:$0xf] }
  0x38   :  { %v3500_v12 = vld [vmem:[#allocation5 + $0x220] sm:$0xf]  ;;  %v4724_v13 = vld [vmem:[#allocation5 + $0x22c] sm:$0xf0]  ;;  %v3373_v21 = vor.u32 %v4692_v11, %v3372_v9  ;;  %1397 = vmatpush.bf16.msra.mxu3 %v3645_v10  ;;  %v3310_v8 = vld [vmem:[#allocation5 + $0xb0] sm:$0xf0]  ;;  %v5328_v9 = vpack.c.b16 %v350_v58, %v350_v58  ;;  %v3457_v10 = vor.u32 %v4710_v63, %v3454_v0 }
  0x39   :  { %v3628_v14 = vld [vmem:[#allocation5 + $0x320] sm:$0xf]  ;;  %v4756_v15 = vld [vmem:[#allocation5 + $0x32c] sm:$0xf0]  ;;  %v3501_v22 = vor.u32 %v4724_v13, %v3500_v12  ;;  %1359 = vmatpush.bf16.msra.mxu0 %v3245_v17  ;;  %v4706_v12 = vld [vmem:[#allocation5 + $0x1a4] sm:$0xf] }
  0x3a   :  { %v3228_v16 = vld [vmem:[#allocation5] sm:$0xf]  ;;  %v4656_v18 = vld [vmem:[#allocation5 + $0xc] sm:$0xf0]  ;;  %v3629_v26 = vor.u32 %v4756_v15, %v3628_v14  ;;  %1372 = vmatpush.bf16.msra.mxu1 %v3373_v21  ;;  %v3438_v13 = vld [vmem:[#allocation5 + $0x1b0] sm:$0xf0]  ;;  %v3313_v15 = vor.u32 %v4674_v7, %v3310_v8 }
  0x3b   :  { %v3356_v19 = vld [vmem:[#allocation5 + $0x100] sm:$0xf]  ;;  %v4688_v20 = vld [vmem:[#allocation5 + $0x10c] sm:$0xf0]  ;;  %v3229_v33 = vor.u32 %v4656_v18, %v3228_v16  ;;  %1385 = vmatpush.bf16.msra.mxu2 %v3501_v22  ;;  %v3294_v21 = vld [vmem:[#allocation5 + $0x90] sm:$0xf0] }
  0x3c   :  { %v3484_v23 = vld [vmem:[#allocation5 + $0x200] sm:$0xf]  ;;  %v4720_v24 = vld [vmem:[#allocation5 + $0x20c] sm:$0xf0]  ;;  %v3357_v38 = vor.u32 %v4688_v20, %v3356_v19  ;;  %1398 = vmatpush.bf16.msra.mxu3 %v3629_v26  ;;  %v4670_v20 = vld [vmem:[#allocation5 + $0x84] sm:$0xf] }
  0x3d   :  { %v136_v25 = vld [vmem:[#allocation2 + $0x8] sm:$0xff]  ;;  %v3612_v27 = vld [vmem:[#allocation5 + $0x300] sm:$0xf]  ;;  %v3485_v39 = vor.u32 %v4720_v24, %v3484_v23  ;;  %1360 = vmatpush.bf16.msra.mxu0 %v3229_v33  ;;  %v138_v22 = vld [vmem:[#allocation2 + $0x18] sm:$0xf]  ;;  %v3441_v23 = vor.u32 %v4706_v12, %v3438_v13 }
  0x3e   :  { %v4752_v28 = vld [vmem:[#allocation5 + $0x30c] sm:$0xf0]  ;;  %v3852_v29 = vld [vmem:[#allocation5 + $0x4e0] sm:$0xf]  ;;  %v351_v36 = vunpack.c.l.b16 %v136_v25  ;;  %v352_v42 = vunpack.c.h.b16 %v136_v25  ;;  %1373 = vmatpush.bf16.msra.mxu1 %v3357_v38  ;;  %v4702_v25 = vld [vmem:[#allocation5 + $0x184] sm:$0xf]  ;;  %v355_v35 = vunpack.c.l.b16 %v138_v22 }
  0x3f   :  { %v4812_v30 = vld [vmem:[#allocation5 + $0x4ec] sm:$0xf0]  ;;  %v3980_v31 = vld [vmem:[#allocation5 + $0x5e0] sm:$0xf]  ;;  %v3613_v43 = vor.u32 %v4752_v28, %v3612_v27  ;;  %1386 = vmatpush.bf16.msra.mxu2 %v3485_v39  ;;  %v3422_v26 = vld [vmem:[#allocation5 + $0x190] sm:$0xf0]  ;;  %v3297_v28 = vor.u32 %v4670_v20, %v3294_v21 }
  0x40   :  { %v4844_v32 = vld [vmem:[#allocation5 + $0x5ec] sm:$0xf0]  ;;  %v3996_v40 = vld [vmem:[#allocation5 + $0x600] sm:$0xf]  ;;  %v3853_v44 = vor.u32 %v4812_v30, %v3852_v29  ;;  %v5320_v53 = vpack.c.b16 %v351_v36, %v351_v36  ;;  %v5324_v60 = vpack.c.b16 %v352_v42, %v352_v42  ;;  %1361 = vmatmul.bf16.vlgmr.msra.gmra.mxu0 %v5322_v57  ;;  %v4666_v33 = vld [vmem:[#allocation5 + $0x64] sm:$0xf]  ;;  %v3425_v36 = vor.u32 %v4702_v25, %v3422_v26 }
  0x41   :  { %v4848_v45 = vld [vmem:[#allocation5 + $0x60c] sm:$0xf0]  ;;  %v3981_v48 = vor.u32 %v4844_v32, %v3980_v31  ;;  %v3836_v50 = vld [vmem:[#allocation5 + $0x4c0] sm:$0xf]  ;;  %1399 = vmatpush.bf16.msra.mxu3 %v3613_v43  ;;  %1374 = vmatmul.bf16.vlgmr.msra.gmra.mxu1 %v5328_v9  ;;  %v4698_v38 = vld [vmem:[#allocation5 + $0x164] sm:$0xf]  ;;  %v3281_v41 = vor.u32 %v4666_v33, %v3278_v34 }
  0x42   :  { %v4808_v51 = vld [vmem:[#allocation5 + $0x4cc] sm:$0xf0]  ;;  %v3964_v52 = vld [vmem:[#allocation5 + $0x5c0] sm:$0xf]  ;;  %v3997_v59 = vor.u32 %v4848_v45, %v3996_v40  ;;  %1405 = vmatpush.bf16.msrb.mxu0 %v3853_v44  ;;  %1387 = vmatmul.bf16.vlgmr.msra.gmra.mxu2 %v5320_v53  ;;  %v3406_v39 = vld [vmem:[#allocation5 + $0x170] sm:$0xf0] }
  0x43   :  { %v4840_v54 = vld [vmem:[#allocation5 + $0x5cc] sm:$0xf0]  ;;  %v3837_v62 = vor.u32 %v4808_v51, %v3836_v50  ;;  %1418 = vmatpush.bf16.msrb.mxu1 %v3981_v48  ;;  %v3820_v3 = vld [vmem:[#allocation5 + $0x4a0] sm:$0xf]  ;;  %v3262_v47 = vld [vmem:[#allocation5 + $0x50] sm:$0xf0]  ;;  %v5332_v48 = vpack.c.b16 %v355_v35, %v355_v35 }
  0x44   :  { %v3965_v1 = vor.u32 %v4840_v54, %v3964_v52  ;;  %v4804_v4 = vld [vmem:[#allocation5 + $0x4ac] sm:$0xf0]  ;;  %v3948_v5 = vld [vmem:[#allocation5 + $0x5a0] sm:$0xf]  ;;  %1438 = vmatpush.bf16.msrb.mxu2 %v3997_v59  ;;  %1400 = vmatmul.bf16.vlgmr.msra.gmra.mxu3 %v5324_v60  ;;  %v4694_v51 = vld [vmem:[#allocation5 + $0x144] sm:$0xf]  ;;  %v3265_v55 = vor.u32 %v4662_v46, %v3262_v47 }
  0x45   :  { %1444 = vmatpush.bf16.msrb.mxu3 %v3345_v49  ;;  %v4836_v6 = vld [vmem:[#allocation5 + $0x5ac] sm:$0xf0]  ;;  %v3821_v11 = vor.u32 %v4804_v4, %v3820_v3  ;;  %v3804_v16 = vld [vmem:[#allocation5 + $0x480] sm:$0xf]  ;;  %v3409_v49 = vor.u32 %v4698_v38, %v3406_v39  ;;  %v3390_v52 = vld [vmem:[#allocation5 + $0x150] sm:$0xf0] }
  0x46   :  { %1406 = vmatpush.bf16.msrb.mxu0 %v3837_v62  ;;  %v3949_v14 = vor.u32 %v4836_v6, %v3948_v5  ;;  %v4800_v17 = vld [vmem:[#allocation5 + $0x48c] sm:$0xf0]  ;;  %v3932_v18 = vld [vmem:[#allocation5 + $0x580] sm:$0xf]  ;;  %v4658_v62 = vld [vmem:[#allocation5 + $0x24] sm:$0xf] }
  0x47   :  { %1419 = vmatpush.bf16.msrb.mxu1 %v3965_v1  ;;  %v4832_v19 = vld [vmem:[#allocation5 + $0x58c] sm:$0xf0]  ;;  %v3805_v24 = vor.u32 %v4800_v17, %v3804_v16  ;;  %v3788_v29 = vld [vmem:[#allocation5 + $0x460] sm:$0xf]  ;;  %v3246_v63 = vld [vmem:[#allocation5 + $0x30] sm:$0xf0]  ;;  %v3393_v1 = vor.u32 %v4694_v51, %v3390_v52 }
  0x48   :  { %1457 = vmatpush.bf16.msra.mxu2 %v3473_v61  ;;  %v3933_v27 = vor.u32 %v4832_v19, %v3932_v18  ;;  %v4796_v30 = vld [vmem:[#allocation5 + $0x46c] sm:$0xf0]  ;;  %v3916_v31 = vld [vmem:[#allocation5 + $0x560] sm:$0xf]  ;;  %v4690_v0 = vld [vmem:[#allocation5 + $0x124] sm:$0xf]  ;;  %v3249_v7 = vor.u32 %v4658_v62, %v3246_v63 }
  0x49   :  { %1445 = vmatpush.bf16.msrb.mxu3 %v3329_v2  ;;  %v4828_v32 = vld [vmem:[#allocation5 + $0x56c] sm:$0xf0]  ;;  %v3789_v37 = vor.u32 %v4796_v30, %v3788_v29  ;;  %v3772_v42 = vld [vmem:[#allocation5 + $0x440] sm:$0xf]  ;;  %v3374_v3 = vld [vmem:[#allocation5 + $0x130] sm:$0xf0] }
  0x4a   :  { %1407 = vmatpush.bf16.msrb.mxu0 %v3821_v11  ;;  %v3917_v40 = vor.u32 %v4828_v32, %v3916_v31  ;;  %v4792_v43 = vld [vmem:[#allocation5 + $0x44c] sm:$0xf0]  ;;  %v3900_v44 = vld [vmem:[#allocation5 + $0x540] sm:$0xf]  ;;  %v137_v5 = vld [vmem:[#allocation2 + $0x10] sm:$0xff]  ;;  %v3377_v19 = vor.u32 %v4690_v0, %v3374_v3 }
  0x4b   :  { %1420 = vmatpush.bf16.msrb.mxu1 %v3949_v14  ;;  %v4824_v45 = vld [vmem:[#allocation5 + $0x54c] sm:$0xf0]  ;;  %v3773_v50 = vor.u32 %v4792_v43, %v3772_v42  ;;  %v3756_v56 = vld [vmem:[#allocation5 + $0x420] sm:$0xf]  ;;  %v4654_v12 = vld [vmem:[#allocation5 + $0x4] sm:$0xf]  ;;  %v353_v18 = vunpack.c.l.b16 %v137_v5 }
  0x4c   :  { %1458 = vmatpush.bf16.msra.mxu2 %v3457_v10  ;;  %v3901_v54 = vor.u32 %v4824_v45, %v3900_v44  ;;  %v4788_v58 = vld [vmem:[#allocation5 + $0x42c] sm:$0xf0]  ;;  %v3884_v59 = vld [vmem:[#allocation5 + $0x520] sm:$0xf]  ;;  %v3230_v13 = vld [vmem:[#allocation5 + $0x10] sm:$0xf0] }
  0x4d   :  { %1446 = vmatpush.bf16.msrb.mxu3 %v3313_v15  ;;  %v4820_v61 = vld [vmem:[#allocation5 + $0x52c] sm:$0xf0]  ;;  %v3757_v2 = vor.u32 %v4788_v58, %v3756_v56  ;;  %v3740_v4 = vld [vmem:[#allocation5 + $0x400] sm:$0xf]  ;;  %v4746_v14 = vld [vmem:[#allocation5 + $0x2e4] sm:$0xf]  ;;  %v3233_v25 = vor.u32 %v4654_v12, %v3230_v13  ;;  %v5336_v34 = vpack.c.b16 %v353_v18, %v353_v18 }
  0x4e   :  { %1408 = vmatpush.bf16.msrb.mxu0 %v3805_v24  ;;  %v3885_v6 = vor.u32 %v4820_v61, %v3884_v59  ;;  %v4784_v8 = vld [vmem:[#allocation5 + $0x40c] sm:$0xf0]  ;;  %v3868_v10 = vld [vmem:[#allocation5 + $0x500] sm:$0xf]  ;;  %v3598_v15 = vld [vmem:[#allocation5 + $0x2f0] sm:$0xf0] }
  0x4f   :  { %1421 = vmatpush.bf16.msrb.mxu1 %v3933_v27  ;;  %v4816_v11 = vld [vmem:[#allocation5 + $0x50c] sm:$0xf0]  ;;  %v4778_v16 = vld [vmem:[#allocation5 + $0x3e4] sm:$0xf]  ;;  %v3726_v17 = vld [vmem:[#allocation5 + $0x3f0] sm:$0xf0]  ;;  %v3741_v20 = vor.u32 %v4784_v8, %v3740_v4 }
  0x50   :  { %1459 = vmatpush.bf16.msra.mxu2 %v3441_v23  ;;  %v4810_v21 = vld [vmem:[#allocation5 + $0x4e4] sm:$0xf]  ;;  %v3854_v22 = vld [vmem:[#allocation5 + $0x4f0] sm:$0xf0]  ;;  %v354_v23 = vunpack.c.h.b16 %v137_v5  ;;  %v3869_v24 = vor.u32 %v4816_v11, %v3868_v10  ;;  %v3729_v29 = vor.u32 %v4778_v16, %v3726_v17 }
  0x51   :  { %1447 = vmatpush.bf16.msrb.mxu3 %v3297_v28  ;;  %v4686_v26 = vld [vmem:[#allocation5 + $0x104] sm:$0xf]  ;;  %v3358_v27 = vld [vmem:[#allocation5 + $0x110] sm:$0xf0]  ;;  %v3601_v28 = vor.u32 %v4746_v14, %v3598_v15  ;;  %v3857_v33 = vor.u32 %v4810_v21, %v3854_v22 }
  0x52   :  { %1409 = vmatpush.bf16.msrb.mxu0 %v3789_v37  ;;  %4010 = vmatmul.msk.bf16.vlgmr.msrb.gmra.mxu2 %vm1349_vm0, %v5332_v48  ;;  %v4842_v30 = vld [vmem:[#allocation5 + $0x5e4] sm:$0xf]  ;;  %v3982_v31 = vld [vmem:[#allocation5 + $0x5f0] sm:$0xf0]  ;;  %v3361_v38 = vor.u32 %v4686_v26, %v3358_v27  ;;  %v5338_v39 = vpack.c.b16 %v354_v23, %v354_v23 }
  0x53   :  { %1422 = vmatpush.bf16.msrb.mxu1 %v3917_v40  ;;  %v4742_v32 = vld [vmem:[#allocation5 + $0x2c4] sm:$0xf]  ;;  %v3582_v35 = vld [vmem:[#allocation5 + $0x2d0] sm:$0xf0]  ;;  %v3985_v42 = vor.u32 %v4842_v30, %v3982_v31 }
  0x54   :  { %1460 = vmatpush.bf16.msra.mxu2 %v3425_v36  ;;  %v4774_v36 = vld [vmem:[#allocation5 + $0x3c4] sm:$0xf]  ;;  %v3710_v37 = vld [vmem:[#allocation5 + $0x3d0] sm:$0xf0]  ;;  %v3585_v43 = vor.u32 %v4742_v32, %v3582_v35 }
  0x55   :  { %1448 = vmatpush.bf16.msrb.mxu3 %v3281_v41  ;;  %v4806_v40 = vld [vmem:[#allocation5 + $0x4c4] sm:$0xf]  ;;  %v3838_v41 = vld [vmem:[#allocation5 + $0x4d0] sm:$0xf0]  ;;  %v3713_v44 = vor.u32 %v4774_v36, %v3710_v37 }
  0x56   :  { %1410 = vmatpush.bf16.msrb.mxu0 %v3773_v50  ;;  %v4838_v45 = vld [vmem:[#allocation5 + $0x5c4] sm:$0xf]  ;;  %v3966_v46 = vld [vmem:[#allocation5 + $0x5d0] sm:$0xf0] }
  0x57   :  { %1423 = vmatpush.bf16.msrb.mxu1 %v3901_v54  ;;  %v4738_v47 = vld [vmem:[#allocation5 + $0x2a4] sm:$0xf]  ;;  %v3566_v50 = vld [vmem:[#allocation5 + $0x2b0] sm:$0xf0]  ;;  %v3969_v56 = vor.u32 %v4838_v45, %v3966_v46 }
  0x58   :  { %1461 = vmatpush.bf16.msra.mxu2 %v3409_v49  ;;  %v3841_v49 = vor.u32 %v4806_v40, %v3838_v41  ;;  %v4770_v51 = vld [vmem:[#allocation5 + $0x3a4] sm:$0xf]  ;;  %v3694_v52 = vld [vmem:[#allocation5 + $0x3b0] sm:$0xf0]  ;;  %v3569_v58 = vor.u32 %v4738_v47, %v3566_v50 }
  0x59   :  { %1449 = vmatpush.bf16.msrb.mxu3 %v3265_v55  ;;  %v4802_v54 = vld [vmem:[#allocation5 + $0x4a4] sm:$0xf]  ;;  %v3822_v55 = vld [vmem:[#allocation5 + $0x4b0] sm:$0xf0]  ;;  %v3697_v59 = vor.u32 %v4770_v51, %v3694_v52 }
  0x5a   :  { %1411 = vmatpush.bf16.msrb.mxu0 %v3757_v2  ;;  %v4834_v61 = vld [vmem:[#allocation5 + $0x5a4] sm:$0xf]  ;;  %v3950_v62 = vld [vmem:[#allocation5 + $0x5b0] sm:$0xf0]  ;;  %v3825_v0 = vor.u32 %v4802_v54, %v3822_v55 }
  0x5b   :  { %1424 = vmatpush.bf16.msrb.mxu1 %v3885_v6  ;;  %v4734_v63 = vld [vmem:[#allocation5 + $0x284] sm:$0xf]  ;;  %v3678_v3 = vld [vmem:[#allocation5 + $0x390] sm:$0xf0]  ;;  %v3953_v6 = vor.u32 %v4834_v61, %v3950_v62  ;;  %v3348_v61 = vld [vmem:[#allocation5 + $0xe8] sm:$0xf] }
  0x5c   :  { %1462 = vmatpush.bf16.msra.mxu2 %v3393_v1  ;;  %v3550_v1 = vld [vmem:[#allocation5 + $0x290] sm:$0xf0]  ;;  %v4766_v2 = vld [vmem:[#allocation5 + $0x384] sm:$0xf]  ;;  %v4685_v62 = vld [vmem:[#allocation5 + $0xf4] sm:$0xf0] }
  0x5d   :  { %1450 = vmatpush.bf16.msrb.mxu3 %v3249_v7  ;;  %v4798_v4 = vld [vmem:[#allocation5 + $0x484] sm:$0xf]  ;;  %v3806_v5 = vld [vmem:[#allocation5 + $0x490] sm:$0xf0]  ;;  %v3553_v7 = vor.u32 %v4734_v63, %v3550_v1  ;;  %v3681_v8 = vor.u32 %v4766_v2, %v3678_v3  ;;  %v3604_v2 = vld [vmem:[#allocation5 + $0x2e8] sm:$0xf] }
  0x5e   :  { %1412 = vmatpush.bf16.msrb.mxu0 %v3741_v20  ;;  %v4830_v10 = vld [vmem:[#allocation5 + $0x584] sm:$0xf]  ;;  %v3934_v11 = vld [vmem:[#allocation5 + $0x590] sm:$0xf0]  ;;  %v3809_v13 = vor.u32 %v4798_v4, %v3806_v5  ;;  %v4749_v3 = vld [vmem:[#allocation5 + $0x2f4] sm:$0xf0] }
  0x5f   :  { %1425 = vmatpush.bf16.msrb.mxu1 %v3869_v24  ;;  %v4730_v12 = vld [vmem:[#allocation5 + $0x264] sm:$0xf]  ;;  %v3534_v14 = vld [vmem:[#allocation5 + $0x270] sm:$0xf0] }
  0x60   :  { %1463 = vmatpush.bf16.msra.mxu2 %v3377_v19  ;;  %v4762_v15 = vld [vmem:[#allocation5 + $0x364] sm:$0xf]  ;;  %v3662_v16 = vld [vmem:[#allocation5 + $0x370] sm:$0xf0]  ;;  %v3937_v19 = vor.u32 %v4830_v10, %v3934_v11  ;;  %v3537_v20 = vor.u32 %v4730_v12, %v3534_v14  ;;  %v3349_v10 = vor.u32 %v4685_v62, %v3348_v61  ;;  %v3732_v11 = vld [vmem:[#allocation5 + $0x3e8] sm:$0xf] }
  0x61   :  { %1451 = vmatpush.bf16.msrb.mxu3 %v3233_v25  ;;  %1413 = vmatmul.bf16.vlgmr.msrb.gmra.mxu0 %v5336_v34  ;;  %v4794_v17 = vld [vmem:[#allocation5 + $0x464] sm:$0xf]  ;;  %v3790_v18 = vld [vmem:[#allocation5 + $0x470] sm:$0xf0]  ;;  %v3665_v21 = vor.u32 %v4762_v15, %v3662_v16  ;;  %v4781_v12 = vld [vmem:[#allocation5 + $0x3f4] sm:$0xf0]  ;;  %v3605_v16 = vor.u32 %v4749_v3, %v3604_v2 }
  0x62   :  { %1470 = vmatpush.bf16.msra.mxu0 %v3601_v28  ;;  %1426 = vmatmul.bf16.vlgmr.msrb.gmra.mxu1 %v5338_v39  ;;  %v4826_v22 = vld [vmem:[#allocation5 + $0x564] sm:$0xf]  ;;  %v3918_v23 = vld [vmem:[#allocation5 + $0x570] sm:$0xf0]  ;;  %v3793_v25 = vor.u32 %v4794_v17, %v3790_v18  ;;  %v3476_v14 = vld [vmem:[#allocation5 + $0x1e8] sm:$0xf] }
  0x63   :  { %1483 = vmatpush.bf16.msra.mxu1 %v3729_v29  ;;  %v4726_v24 = vld [vmem:[#allocation5 + $0x244] sm:$0xf]  ;;  %v3518_v26 = vld [vmem:[#allocation5 + $0x250] sm:$0xf0]  ;;  %v3921_v31 = vor.u32 %v4826_v22, %v3918_v23  ;;  %v4717_v15 = vld [vmem:[#allocation5 + $0x1f4] sm:$0xf0] }
  0x64   :  { %1464 = vmatpush.bf16.msra.mxu2 %v3361_v38  ;;  %1452 = vmatmul.bf16.vlgmr.msrb.gmra.mxu3 %v5322_v57  ;;  %v4758_v27 = vld [vmem:[#allocation5 + $0x344] sm:$0xf]  ;;  %v3646_v28 = vld [vmem:[#allocation5 + $0x350] sm:$0xf0]  ;;  %v3332_v18 = vld [vmem:[#allocation5 + $0xc8] sm:$0xf]  ;;  %v3477_v23 = vor.u32 %v4717_v15, %v3476_v14 }
  0x65   :  { %1496 = vmatpush.bf16.msra.mxu3 %v3857_v33  ;;  %v4790_v29 = vld [vmem:[#allocation5 + $0x444] sm:$0xf]  ;;  %v3774_v30 = vld [vmem:[#allocation5 + $0x450] sm:$0xf0]  ;;  %v3521_v33 = vor.u32 %v4726_v24, %v3518_v26  ;;  %v3649_v35 = vor.u32 %v4758_v27, %v3646_v28  ;;  %v4745_v22 = vld [vmem:[#allocation5 + $0x2d4] sm:$0xf0] }
  0x66   :  { %1471 = vmatpush.bf16.msra.mxu0 %v3585_v43  ;;  %v4822_v32 = vld [vmem:[#allocation5 + $0x544] sm:$0xf]  ;;  %v3902_v36 = vld [vmem:[#allocation5 + $0x550] sm:$0xf0]  ;;  %v3777_v40 = vor.u32 %v4790_v29, %v3774_v30  ;;  %v3716_v24 = vld [vmem:[#allocation5 + $0x3c8] sm:$0xf] }
  0x67   :  { %1484 = vmatpush.bf16.msra.mxu1 %v3713_v44  ;;  %1465 = vmatmul.bf16.vlgmr.msra.gmra.mxu2 %v5328_v9  ;;  %v4722_v37 = vld [vmem:[#allocation5 + $0x224] sm:$0xf]  ;;  %v3502_v38 = vld [vmem:[#allocation5 + $0x230] sm:$0xf0]  ;;  %v3905_v45 = vor.u32 %v4822_v32, %v3902_v36  ;;  %v3460_v27 = vld [vmem:[#allocation5 + $0x1c8] sm:$0xf] }
  0x68   :  { %1509 = vmatpush.bf16.msrb.mxu2 %v3985_v42  ;;  %v4754_v41 = vld [vmem:[#allocation5 + $0x324] sm:$0xf]  ;;  %v3630_v42 = vld [vmem:[#allocation5 + $0x330] sm:$0xf0]  ;;  %v4713_v28 = vld [vmem:[#allocation5 + $0x1d4] sm:$0xf0] }
  0x69   :  { %1497 = vmatpush.bf16.msra.mxu3 %v3841_v49  ;;  %v4786_v43 = vld [vmem:[#allocation5 + $0x424] sm:$0xf]  ;;  %v3758_v44 = vld [vmem:[#allocation5 + $0x430] sm:$0xf0]  ;;  %v3505_v49 = vor.u32 %v4722_v37, %v3502_v38  ;;  %v3633_v50 = vor.u32 %v4754_v41, %v3630_v42  ;;  %v3316_v30 = vld [vmem:[#allocation5 + $0xa8] sm:$0xf]  ;;  %v3461_v36 = vor.u32 %v4713_v28, %v3460_v27 }
  0x6a   :  { %1472 = vmatpush.bf16.msra.mxu0 %v3569_v58  ;;  %v4818_v46 = vld [vmem:[#allocation5 + $0x524] sm:$0xf]  ;;  %v3886_v47 = vld [vmem:[#allocation5 + $0x530] sm:$0xf0]  ;;  %v3761_v55 = vor.u32 %v4786_v43, %v3758_v44  ;;  %v3700_v37 = vld [vmem:[#allocation5 + $0x3a8] sm:$0xf] }
  0x6b   :  { %1485 = vmatpush.bf16.msra.mxu1 %v3697_v59  ;;  %v4718_v51 = vld [vmem:[#allocation5 + $0x204] sm:$0xf]  ;;  %v3486_v52 = vld [vmem:[#allocation5 + $0x210] sm:$0xf0]  ;;  %v4773_v38 = vld [vmem:[#allocation5 + $0x3b4] sm:$0xf0] }
  0x6c   :  { %1510 = vmatpush.bf16.msrb.mxu2 %v3969_v56  ;;  %v4750_v54 = vld [vmem:[#allocation5 + $0x304] sm:$0xf]  ;;  %v3614_v56 = vld [vmem:[#allocation5 + $0x310] sm:$0xf0]  ;;  %v3489_v4 = vor.u32 %v4718_v51, %v3486_v52  ;;  %v3444_v41 = vld [vmem:[#allocation5 + $0x1a8] sm:$0xf] }
  0x6d   :  { %1498 = vmatpush.bf16.msra.mxu3 %v3825_v0  ;;  %v4782_v58 = vld [vmem:[#allocation5 + $0x404] sm:$0xf]  ;;  %v3742_v59 = vld [vmem:[#allocation5 + $0x410] sm:$0xf0]  ;;  %v3889_v0 = vor.u32 %v4818_v46, %v3886_v47  ;;  %v3617_v5 = vor.u32 %v4750_v54, %v3614_v56  ;;  %v4709_v42 = vld [vmem:[#allocation5 + $0x1b4] sm:$0xf0]  ;;  %v3701_v46 = vor.u32 %v4773_v38, %v3700_v37 }
  0x6e   :  { %1473 = vmatpush.bf16.msra.mxu0 %v3553_v7  ;;  %v4846_v63 = vld [vmem:[#allocation5 + $0x604] sm:$0xf]  ;;  %v3998_v1 = vld [vmem:[#allocation5 + $0x610] sm:$0xf0]  ;;  %v3300_v44 = vld [vmem:[#allocation5 + $0x88] sm:$0xf] }
  0x6f   :  { %1486 = vmatpush.bf16.msra.mxu1 %v3681_v8  ;;  %v3870_v7 = vld [vmem:[#allocation5 + $0x510] sm:$0xf0]  ;;  %v3745_v8 = vor.u32 %v4782_v58, %v3742_v59  ;;  %v3556_v47 = vld [vmem:[#allocation5 + $0x288] sm:$0xf]  ;;  %v4769_v52 = vld [vmem:[#allocation5 + $0x394] sm:$0xf0] }
  0x70   :  { %1511 = vmatpush.bf16.msrb.mxu2 %v3953_v6  ;;  %v4814_v6 = vld [vmem:[#allocation5 + $0x504] sm:$0xf]  ;;  %v3684_v51 = vld [vmem:[#allocation5 + $0x388] sm:$0xf]  ;;  %v4705_v56 = vld [vmem:[#allocation5 + $0x194] sm:$0xf0] }
  0x71   :  { %1499 = vmatpush.bf16.msra.mxu3 %v3809_v13  ;;  %v4001_v13 = vor.u32 %v4846_v63, %v3998_v1  ;;  %v3873_v17 = vor.u32 %v4814_v6, %v3870_v7  ;;  %v3284_v59 = vld [vmem:[#allocation5 + $0x68] sm:$0xf]  ;;  %v4669_v61 = vld [vmem:[#allocation5 + $0x74] sm:$0xf0]  ;;  %v3685_v62 = vor.u32 %v4769_v52, %v3684_v51  ;;  %v4683_v51 = vld [vmem:[#allocation5 + $0xec] sm:$0xf] }
  0x72   :  { %1474 = vmatpush.bf16.msra.mxu0 %v3537_v20  ;;  %v3733_v20 = vor.u32 %v4781_v12, %v3732_v11  ;;  %v3540_v63 = vld [vmem:[#allocation5 + $0x268] sm:$0xf]  ;;  %v4765_v3 = vld [vmem:[#allocation5 + $0x374] sm:$0xf0]  ;;  %v3350_v52 = vld [vmem:[#allocation5 + $0xf8] sm:$0xf0] }
  0x73   :  { %1487 = vmatpush.bf16.msra.mxu1 %v3665_v21  ;;  %v3588_v21 = vld [vmem:[#allocation5 + $0x2c8] sm:$0xf]  ;;  %v4701_v6 = vld [vmem:[#allocation5 + $0x174] sm:$0xf0] }
  0x74   :  { %1512 = vmatpush.bf16.msrb.mxu2 %v3937_v19  ;;  %v4681_v19 = vld [vmem:[#allocation5 + $0xd4] sm:$0xf0]  ;;  %v3589_v29 = vor.u32 %v4745_v22, %v3588_v21  ;;  %v3668_v2 = vld [vmem:[#allocation5 + $0x368] sm:$0xf] }
  0x75   :  { %1500 = vmatpush.bf16.msra.mxu3 %v3793_v25  ;;  %v4777_v25 = vld [vmem:[#allocation5 + $0x3d4] sm:$0xf0]  ;;  %v3333_v26 = vor.u32 %v4681_v19, %v3332_v18  ;;  %v3669_v11 = vor.u32 %v4765_v3, %v3668_v2  ;;  %v3524_v12 = vld [vmem:[#allocation5 + $0x248] sm:$0xf]  ;;  %v3353_v3 = vor.u32 %v4683_v51, %v3350_v52 }
  0x76   :  { %1475 = vmatpush.bf16.msra.mxu0 %v3521_v33  ;;  %v3717_v32 = vor.u32 %v4777_v25, %v3716_v24  ;;  %v3572_v33 = vld [vmem:[#allocation5 + $0x2a8] sm:$0xf]  ;;  %v4697_v19 = vld [vmem:[#allocation5 + $0x154] sm:$0xf0] }
  0x77   :  { %1488 = vmatpush.bf16.msra.mxu1 %v3649_v35  ;;  %v4741_v35 = vld [vmem:[#allocation5 + $0x2b4] sm:$0xf0]  ;;  %v3652_v15 = vld [vmem:[#allocation5 + $0x348] sm:$0xf] }
  0x78   :  { %1513 = vmatpush.bf16.msrb.mxu2 %v3921_v31  ;;  %v4677_v31 = vld [vmem:[#allocation5 + $0xb4] sm:$0xf0]  ;;  %v3573_v43 = vor.u32 %v4741_v35, %v3572_v33  ;;  %v3396_v18 = vld [vmem:[#allocation5 + $0x148] sm:$0xf] }
  0x79   :  { %1501 = vmatpush.bf16.msra.mxu3 %v3777_v40  ;;  %v3317_v40 = vor.u32 %v4677_v31, %v3316_v30  ;;  %v3252_v21 = vld [vmem:[#allocation5 + $0x28] sm:$0xf]  ;;  %v4661_v22 = vld [vmem:[#allocation5 + $0x34] sm:$0xf0] }
  0x7a   :  { %1476 = vmatpush.bf16.msra.mxu0 %v3505_v49  ;;  %v4737_v49 = vld [vmem:[#allocation5 + $0x294] sm:$0xf0]  ;;  %v3508_v24 = vld [vmem:[#allocation5 + $0x228] sm:$0xf] }
  0x7b   :  { %1489 = vmatpush.bf16.msra.mxu1 %v3633_v50  ;;  %v3445_v50 = vor.u32 %v4709_v42, %v3444_v41  ;;  %v3557_v58 = vor.u32 %v4737_v49, %v3556_v47  ;;  %v4725_v25 = vld [vmem:[#allocation5 + $0x234] sm:$0xf0]  ;;  %v3636_v27 = vld [vmem:[#allocation5 + $0x328] sm:$0xf] }
  0x7c   :  { %1514 = vmatpush.bf16.msrb.mxu2 %v3905_v45  ;;  %v4673_v45 = vld [vmem:[#allocation5 + $0x94] sm:$0xf0]  ;;  %v3380_v30 = vld [vmem:[#allocation5 + $0x128] sm:$0xf]  ;;  %v3509_v33 = vor.u32 %v4725_v25, %v3508_v24 }
  0x7d   :  { %1502 = vmatpush.bf16.msra.mxu3 %v3761_v55  ;;  %v3301_v54 = vor.u32 %v4673_v45, %v3300_v44  ;;  %v3428_v55 = vld [vmem:[#allocation5 + $0x188] sm:$0xf]  ;;  %v4757_v28 = vld [vmem:[#allocation5 + $0x334] sm:$0xf0] }
  0x7e   :  { %1477 = vmatpush.bf16.msra.mxu0 %v3489_v4  ;;  %v3429_v1 = vor.u32 %v4705_v56, %v3428_v55  ;;  %v3285_v4 = vor.u32 %v4669_v61, %v3284_v59  ;;  %v4693_v31 = vld [vmem:[#allocation5 + $0x134] sm:$0xf0]  ;;  %v3637_v38 = vor.u32 %v4757_v28, %v3636_v27  ;;  %v3492_v41 = vld [vmem:[#allocation5 + $0x208] sm:$0xf]  ;;  %v3446_v27 = vld [vmem:[#allocation5 + $0x1b8] sm:$0xf0] }
  0x7f   :  { %1490 = vmatpush.bf16.msra.mxu1 %v3617_v5  ;;  %v3412_v5 = vld [vmem:[#allocation5 + $0x168] sm:$0xf]  ;;  %v4657_v35 = vld [vmem:[#allocation5 + $0x14] sm:$0xf0]  ;;  %v3381_v44 = vor.u32 %v4693_v31, %v3380_v30  ;;  %v4671_v30 = vld [vmem:[#allocation5 + $0x8c] sm:$0xf] }
  0x80   :  { %1515 = vmatpush.bf16.msrb.mxu2 %v3889_v0  ;;  %v4733_v0 = vld [vmem:[#allocation5 + $0x274] sm:$0xf0]  ;;  %v3413_v14 = vor.u32 %v4701_v6, %v3412_v5  ;;  %v3988_v56 = vld [vmem:[#allocation5 + $0x5e8] sm:$0xf]  ;;  %v4679_v5 = vld [vmem:[#allocation5 + $0xcc] sm:$0xf] }
  0x81   :  { %1503 = vmatpush.bf16.msra.mxu3 %v3745_v8  ;;  %1478 = vmatmul.bf16.vlgmr.msra.gmra.mxu0 %v5320_v53  ;;  %v3541_v7 = vor.u32 %v4733_v0, %v3540_v63  ;;  %v3268_v8 = vld [vmem:[#allocation5 + $0x48] sm:$0xf]  ;;  %v4813_v37 = vld [vmem:[#allocation5 + $0x4f4] sm:$0xf0]  ;;  %v4715_v0 = vld [vmem:[#allocation5 + $0x1ec] sm:$0xf] }
  0x82   :  { %1561 = vmatpush.bf16.msrb.mxu0 %v3605_v16  ;;  %1491 = vmatmul.bf16.vlgmr.msra.gmra.mxu1 %v5324_v60  ;;  %v4761_v16 = vld [vmem:[#allocation5 + $0x354] sm:$0xf0]  ;;  %v3844_v59 = vld [vmem:[#allocation5 + $0x4c8] sm:$0xf]  ;;  %v3334_v6 = vld [vmem:[#allocation5 + $0xd8] sm:$0xf0] }
  0x83   :  { %1535 = vmatpush.bf16.msrb.mxu1 %v3349_v10  ;;  %v4665_v10 = vld [vmem:[#allocation5 + $0x54] sm:$0xf0]  ;;  %v3812_v24 = vld [vmem:[#allocation5 + $0x488] sm:$0xf]  ;;  %v3302_v31 = vld [vmem:[#allocation5 + $0x98] sm:$0xf0] }
  0x84   :  { %1516 = vmatpush.bf16.msrb.mxu2 %v3873_v17  ;;  %1504 = vmatmul.bf16.vlgmr.msra.gmra.mxu3 %v5336_v34  ;;  %v3269_v17 = vor.u32 %v4665_v10, %v3268_v8  ;;  %v4721_v42 = vld [vmem:[#allocation5 + $0x214] sm:$0xf0]  ;;  %v3972_v10 = vld [vmem:[#allocation5 + $0x5c8] sm:$0xf] }
  0x85   :  { %1529 = vmatpush.bf16.msrb.mxu3 %v4001_v13  ;;  %v4729_v13 = vld [vmem:[#allocation5 + $0x254] sm:$0xf0]  ;;  %v3493_v55 = vor.u32 %v4721_v42, %v3492_v41  ;;  %v3430_v41 = vld [vmem:[#allocation5 + $0x198] sm:$0xf0]  ;;  %v3305_v42 = vor.u32 %v4671_v30, %v3302_v31  ;;  %v3780_v51 = vld [vmem:[#allocation5 + $0x448] sm:$0xf] }
  0x86   :  { %1562 = vmatpush.bf16.msrb.mxu0 %v3589_v29  ;;  %v3253_v29 = vor.u32 %v4661_v22, %v3252_v21  ;;  %v4753_v45 = vld [vmem:[#allocation5 + $0x314] sm:$0xf0]  ;;  %v3956_v22 = vld [vmem:[#allocation5 + $0x5a8] sm:$0xf]  ;;  %v3734_v30 = vld [vmem:[#allocation5 + $0x3f8] sm:$0xf0] }
  0x87   :  { %1536 = vmatpush.bf16.msrb.mxu1 %v3333_v26  ;;  %1517 = vmatmul.bf16.vlgmr.msrb.gmra.mxu2 %v5338_v39  ;;  %v3397_v26 = vor.u32 %v4697_v19, %v3396_v18  ;;  %v4849_v47 = vld [vmem:[#allocation5 + $0x614] sm:$0xf0]  ;;  %v4675_v18 = vld [vmem:[#allocation5 + $0xac] sm:$0xf]  ;;  %v3318_v19 = vld [vmem:[#allocation5 + $0xb8] sm:$0xf0] }
  0x88   :  { %1574 = vmatpush.bf16.msra.mxu2 %v3733_v20  ;;  %v3525_v20 = vor.u32 %v4729_v13, %v3524_v12  ;;  %v3828_v12 = vld [vmem:[#allocation5 + $0x4a8] sm:$0xf]  ;;  %v4805_v13 = vld [vmem:[#allocation5 + $0x4b4] sm:$0xf0]  ;;  %v3321_v28 = vor.u32 %v4675_v18, %v3318_v19  ;;  %v3382_v18 = vld [vmem:[#allocation5 + $0x138] sm:$0xf0] }
  0x89   :  { %1548 = vmatpush.bf16.msra.mxu3 %v3477_v23  ;;  %v3653_v23 = vor.u32 %v4761_v16, %v3652_v15  ;;  %v3462_v15 = vld [vmem:[#allocation5 + $0x1d8] sm:$0xf0]  ;;  %v3337_v16 = vor.u32 %v4679_v5, %v3334_v6  ;;  %v4801_v25 = vld [vmem:[#allocation5 + $0x494] sm:$0xf0] }
  0x8a   :  { %1563 = vmatpush.bf16.msrb.mxu0 %v3573_v43  ;;  %v3620_v43 = vld [vmem:[#allocation5 + $0x308] sm:$0xf]  ;;  %v4793_v52 = vld [vmem:[#allocation5 + $0x454] sm:$0xf0]  ;;  %v3398_v5 = vld [vmem:[#allocation5 + $0x158] sm:$0xf0] }
  0x8b   :  { %1537 = vmatpush.bf16.msrb.mxu1 %v3317_v40  ;;  %v3364_v40 = vld [vmem:[#allocation5 + $0x108] sm:$0xf]  ;;  %v3621_v61 = vor.u32 %v4753_v45, %v3620_v43  ;;  %v3286_v45 = vld [vmem:[#allocation5 + $0x78] sm:$0xf0] }
  0x8c   :  { %1575 = vmatpush.bf16.msra.mxu2 %v3717_v32  ;;  %v3236_v32 = vld [vmem:[#allocation5 + $0x8] sm:$0xf] }
  0x8d   :  { %1549 = vmatpush.bf16.msra.mxu3 %v3461_v36  ;;  %v3860_v36 = vld [vmem:[#allocation5 + $0x4e8] sm:$0xf]  ;;  %v3237_v49 = vor.u32 %v4657_v35, %v3236_v32  ;;  %v3813_v32 = vor.u32 %v4801_v25, %v3812_v24  ;;  %v4655_v24 = vld [vmem:[#allocation5 + $0xc] sm:$0xf]  ;;  %v3238_v25 = vld [vmem:[#allocation5 + $0x18] sm:$0xf0] }
  0x8e   :  { %1564 = vmatpush.bf16.msrb.mxu0 %v3557_v58  ;;  %v4845_v58 = vld [vmem:[#allocation5 + $0x5f4] sm:$0xf0]  ;;  %v3940_v35 = vld [vmem:[#allocation5 + $0x588] sm:$0xf] }
  0x8f   :  { %1538 = vmatpush.bf16.msrb.mxu1 %v3301_v54  ;;  %v3861_v54 = vor.u32 %v4813_v37, %v3860_v36  ;;  %v4833_v36 = vld [vmem:[#allocation5 + $0x594] sm:$0xf0]  ;;  %v3796_v37 = vld [vmem:[#allocation5 + $0x468] sm:$0xf] }
  0x90   :  { %1576 = vmatpush.bf16.msra.mxu2 %v3701_v46  ;;  %v4004_v46 = vld [vmem:[#allocation5 + $0x608] sm:$0xf]  ;;  %v3941_v43 = vor.u32 %v4833_v36, %v3940_v35  ;;  %v4743_v35 = vld [vmem:[#allocation5 + $0x2cc] sm:$0xf]  ;;  %v3241_v36 = vor.u32 %v4655_v24, %v3238_v25  ;;  %v3942_v24 = vld [vmem:[#allocation5 + $0x598] sm:$0xf0] }
  0x91   :  { %1550 = vmatpush.bf16.msra.mxu3 %v3445_v50  ;;  %v4689_v50 = vld [vmem:[#allocation5 + $0x114] sm:$0xf0]  ;;  %v4005_v63 = vor.u32 %v4849_v47, %v4004_v46 }
  0x92   :  { %1565 = vmatpush.bf16.msrb.mxu0 %v3541_v7  ;;  %v3365_v2 = vor.u32 %v4689_v50, %v3364_v40  ;;  %v4703_v40 = vld [vmem:[#allocation5 + $0x18c] sm:$0xf]  ;;  %v4829_v50 = vld [vmem:[#allocation5 + $0x574] sm:$0xf0] }
  0x93   :  { %1539 = vmatpush.bf16.msrb.mxu1 %v3285_v4  ;;  %v3989_v4 = vor.u32 %v4845_v58, %v3988_v56  ;;  %v3433_v47 = vor.u32 %v4703_v40, %v3430_v41  ;;  %v3366_v40 = vld [vmem:[#allocation5 + $0x118] sm:$0xf0] }
  0x94   :  { %1577 = vmatpush.bf16.msra.mxu2 %v3685_v62  ;;  %4011 = vmatmul.msk.bf16.vlgmr.msrb.gmra.mxu3 %vm1349_vm0, %v5332_v48  ;;  %v4809_v62 = vld [vmem:[#allocation5 + $0x4d4] sm:$0xf0] }
  0x95   :  { %1551 = vmatpush.bf16.msra.mxu3 %v3429_v1  ;;  %v3478_v1 = vld [vmem:[#allocation5 + $0x1f8] sm:$0xf0]  ;;  %v3845_v7 = vor.u32 %v4809_v62, %v3844_v59  ;;  %v4663_v59 = vld [vmem:[#allocation5 + $0x4c] sm:$0xf]  ;;  %v3781_v62 = vor.u32 %v4793_v52, %v3780_v51 }
  0x96   :  { %1566 = vmatpush.bf16.msrb.mxu0 %v3525_v20  ;;  %v3481_v8 = vor.u32 %v4715_v0, %v3478_v1  ;;  %v3829_v20 = vor.u32 %v4805_v13, %v3828_v12  ;;  %v3908_v0 = vld [vmem:[#allocation5 + $0x548] sm:$0xf]  ;;  %v4825_v1 = vld [vmem:[#allocation5 + $0x554] sm:$0xf0]  ;;  %v4807_v51 = vld [vmem:[#allocation5 + $0x4cc] sm:$0xf] }
  0x97   :  { %1540 = vmatpush.bf16.msrb.mxu1 %v3269_v17  ;;  %v3892_v13 = vld [vmem:[#allocation5 + $0x528] sm:$0xf]  ;;  %v3846_v52 = vld [vmem:[#allocation5 + $0x4d8] sm:$0xf0] }
  0x98   :  { %1578 = vmatpush.bf16.msra.mxu2 %v3669_v11  ;;  %v4841_v11 = vld [vmem:[#allocation5 + $0x5d4] sm:$0xf0] }
  0x99   :  { %1552 = vmatpush.bf16.msra.mxu3 %v3413_v14  ;;  %v4711_v14 = vld [vmem:[#allocation5 + $0x1cc] sm:$0xf]  ;;  %v3973_v17 = vor.u32 %v4841_v11, %v3972_v10  ;;  %v3254_v10 = vld [vmem:[#allocation5 + $0x38] sm:$0xf0] }
  0x9a   :  { %1567 = vmatpush.bf16.msrb.mxu0 %v3509_v33  ;;  %v3465_v21 = vor.u32 %v4711_v14, %v3462_v15  ;;  %v4821_v14 = vld [vmem:[#allocation5 + $0x534] sm:$0xf0]  ;;  %v3748_v15 = vld [vmem:[#allocation5 + $0x408] sm:$0xf] }
  0x9b   :  { %1541 = vmatpush.bf16.msrb.mxu1 %v3253_v29 }
  0x9c   :  { %1579 = vmatpush.bf16.msra.mxu2 %v3653_v23  ;;  %v4837_v23 = vld [vmem:[#allocation5 + $0x5b4] sm:$0xf0] }
  0x9d   :  { %1553 = vmatpush.bf16.msra.mxu3 %v3397_v26  ;;  %v4707_v26 = vld [vmem:[#allocation5 + $0x1ac] sm:$0xf]  ;;  %v3957_v29 = vor.u32 %v4837_v23, %v3956_v22  ;;  %v3893_v22 = vor.u32 %v4821_v14, %v3892_v13  ;;  %v3876_v23 = vld [vmem:[#allocation5 + $0x508] sm:$0xf] }
  0x9e   :  { %1568 = vmatpush.bf16.msrb.mxu0 %v3493_v55  ;;  %v3449_v33 = vor.u32 %v4707_v26, %v3446_v27  ;;  %v3414_v55 = vld [vmem:[#allocation5 + $0x178] sm:$0xf0]  ;;  %v4767_v14 = vld [vmem:[#allocation5 + $0x38c] sm:$0xf] }
  0x9f   :  { %1542 = vmatpush.bf16.msrb.mxu1 %v3237_v49  ;;  %v3924_v49 = vld [vmem:[#allocation5 + $0x568] sm:$0xf] }
  0xa0   :  { %1580 = vmatpush.bf16.msra.mxu2 %v3637_v38  ;;  %v4797_v38 = vld [vmem:[#allocation5 + $0x474] sm:$0xf0]  ;;  %v3925_v58 = vor.u32 %v4829_v50, %v3924_v49  ;;  %v3718_v50 = vld [vmem:[#allocation5 + $0x3d8] sm:$0xf0] }
  0xa1   :  { %1554 = vmatpush.bf16.msra.mxu3 %v3381_v44  ;;  %1569 = vmatmul.bf16.vlgmr.msrb.gmra.mxu0 %v5320_v53  ;;  %v4667_v44 = vld [vmem:[#allocation5 + $0x6c] sm:$0xf]  ;;  %v3797_v46 = vor.u32 %v4797_v38, %v3796_v37  ;;  %v3590_v37 = vld [vmem:[#allocation5 + $0x2d8] sm:$0xf0] }
  0xa2   :  { %1620 = vmatpush.bf16.msra.mxu0 %v4005_v63  ;;  %1543 = vmatmul.bf16.vlgmr.msrb.gmra.mxu1 %v5322_v57  ;;  %v3289_v56 = vor.u32 %v4667_v44, %v3286_v45  ;;  %v4687_v38 = vld [vmem:[#allocation5 + $0x10c] sm:$0xf] }
  0xa3   :  { %1587 = vmatpush.bf16.msra.mxu1 %v3861_v54  ;;  %v4699_v54 = vld [vmem:[#allocation5 + $0x16c] sm:$0xf]  ;;  %v3369_v49 = vor.u32 %v4687_v38, %v3366_v40  ;;  %v3926_v38 = vld [vmem:[#allocation5 + $0x578] sm:$0xf0] }
  0xa4   :  { %1581 = vmatpush.bf16.msra.mxu2 %v3621_v61  ;;  %v3270_v61 = vld [vmem:[#allocation5 + $0x58] sm:$0xf0]  ;;  %v3417_v63 = vor.u32 %v4699_v54, %v3414_v55  ;;  %v4739_v55 = vld [vmem:[#allocation5 + $0x2ac] sm:$0xf] }
  0xa5   :  { %1555 = vmatpush.bf16.msra.mxu3 %v3365_v2  ;;  %v3764_v2 = vld [vmem:[#allocation5 + $0x428] sm:$0xf]  ;;  %v3273_v6 = vor.u32 %v4663_v59, %v3270_v61  ;;  %v3974_v59 = vld [vmem:[#allocation5 + $0x5d8] sm:$0xf0] }
  0xa6   :  { %1639 = vmatpush.bf16.msrb.mxu0 %v3481_v8  ;;  %v4659_v8 = vld [vmem:[#allocation5 + $0x2c] sm:$0xf] }
  0xa7   :  { %1588 = vmatpush.bf16.msra.mxu1 %v3845_v7  ;;  %1582 = vmatmul.bf16.vlgmr.msra.gmra.mxu2 %v5324_v60  ;;  %v3909_v7 = vor.u32 %v4825_v1, %v3908_v0  ;;  %v3257_v19 = vor.u32 %v4659_v8, %v3254_v10  ;;  %v5357_v0 = vld [vmem:[#allocation7] sm:$0xf]  ;;  %v4835_v8 = vld [vmem:[#allocation5 + $0x5ac] sm:$0xf]  ;;  %v3958_v10 = vld [vmem:[#allocation5 + $0x5b8] sm:$0xf0] }
  0xa8   :  { %1626 = vmatpush.bf16.msrb.mxu2 %v3353_v3  ;;  %1556 = vmatmul.bf16.vlgmr.msra.gmra.mxu3 %v5328_v9  ;;  %v4789_v3 = vld [vmem:[#allocation5 + $0x434] sm:$0xf0] }
  0xa9   :  { %1600 = vmatpush.bf16.msrb.mxu3 %v3989_v4  ;;  %v4695_v4 = vld [vmem:[#allocation5 + $0x14c] sm:$0xf]  ;;  %v3765_v11 = vor.u32 %v4789_v3, %v3764_v2  ;;  %v3702_v2 = vld [vmem:[#allocation5 + $0x3b8] sm:$0xf0] }
  0xaa   :  { %1640 = vmatpush.bf16.msrb.mxu0 %v3465_v21  ;;  %v3401_v12 = vor.u32 %v4695_v4, %v3398_v5  ;;  %v3606_v21 = vld [vmem:[#allocation5 + $0x2f8] sm:$0xf0]  ;;  %v4803_v3 = vld [vmem:[#allocation5 + $0x4ac] sm:$0xf] }
  0xab   :  { %1589 = vmatpush.bf16.msra.mxu1 %v3829_v20  ;;  %v4747_v20 = vld [vmem:[#allocation5 + $0x2ec] sm:$0xf]  ;;  %v3830_v4 = vld [vmem:[#allocation5 + $0x4b8] sm:$0xf0] }
  0xac   :  { %1627 = vmatpush.bf16.msrb.mxu2 %v3337_v16  ;;  %v4785_v16 = vld [vmem:[#allocation5 + $0x414] sm:$0xf0]  ;;  %v3609_v31 = vor.u32 %v4747_v20, %v3606_v21  ;;  %v3833_v13 = vor.u32 %v4803_v3, %v3830_v4  ;;  %v4731_v20 = vld [vmem:[#allocation5 + $0x26c] sm:$0xf]  ;;  %v3766_v4 = vld [vmem:[#allocation5 + $0x438] sm:$0xf0] }
  0xad   :  { %1601 = vmatpush.bf16.msrb.mxu3 %v3973_v17  ;;  %v4691_v17 = vld [vmem:[#allocation5 + $0x12c] sm:$0xf]  ;;  %v3749_v26 = vor.u32 %v4785_v16, %v3748_v15  ;;  %v3686_v16 = vld [vmem:[#allocation5 + $0x398] sm:$0xf0] }
  0xae   :  { %1641 = vmatpush.bf16.msrb.mxu0 %v3449_v33  ;;  %v3385_v27 = vor.u32 %v4691_v17, %v3382_v18  ;;  %v3862_v33 = vld [vmem:[#allocation5 + $0x4f8] sm:$0xf0]  ;;  %v4799_v17 = vld [vmem:[#allocation5 + $0x48c] sm:$0xf]  ;;  %v3689_v25 = vor.u32 %v4767_v14, %v3686_v16 }
  0xaf   :  { %1590 = vmatpush.bf16.msra.mxu1 %v3813_v32  ;;  %v4811_v32 = vld [vmem:[#allocation5 + $0x4ec] sm:$0xf]  ;;  %v3814_v18 = vld [vmem:[#allocation5 + $0x498] sm:$0xf0] }
  0xb0   :  { %1628 = vmatpush.bf16.msrb.mxu2 %v3321_v28  ;;  %v4817_v28 = vld [vmem:[#allocation5 + $0x514] sm:$0xf0]  ;;  %v3865_v45 = vor.u32 %v4811_v32, %v3862_v33  ;;  %v4727_v33 = vld [vmem:[#allocation5 + $0x24c] sm:$0xf] }
  0xb1   :  { %1602 = vmatpush.bf16.msrb.mxu3 %v3957_v29  ;;  %4012 = vmatmul.msk.bf16.vlgmr.msra.gmra.mxu0 %vm1349_vm0, %v5332_v48  ;;  %v4779_v29 = vld [vmem:[#allocation5 + $0x3ec] sm:$0xf]  ;;  %v3877_v41 = vor.u32 %v4817_v28, %v3876_v23 }
  0xb2   :  { %1642 = vmatpush.bf16.msrb.mxu0 %v3433_v47  ;;  %v3737_v44 = vor.u32 %v4779_v29, %v3734_v30  ;;  %v3593_v47 = vor.u32 %v4743_v35, %v3590_v37  ;;  %v4831_v23 = vld [vmem:[#allocation5 + $0x58c] sm:$0xf]  ;;  %v3670_v29 = vld [vmem:[#allocation5 + $0x378] sm:$0xf0] }
  0xb3   :  { %1591 = vmatpush.bf16.msra.mxu1 %v3797_v46  ;;  %v4775_v46 = vld [vmem:[#allocation5 + $0x3cc] sm:$0xf]  ;;  %v3526_v35 = vld [vmem:[#allocation5 + $0x258] sm:$0xf0] }
  0xb4   :  { %1629 = vmatpush.bf16.msrb.mxu2 %v3305_v42  ;;  %v4843_v42 = vld [vmem:[#allocation5 + $0x5ec] sm:$0xf]  ;;  %v3721_v61 = vor.u32 %v4775_v46, %v3718_v50  ;;  %v3782_v50 = vld [vmem:[#allocation5 + $0x458] sm:$0xf0] }
  0xb5   :  { %1603 = vmatpush.bf16.msrb.mxu3 %v3941_v43  ;;  %v3990_v43 = vld [vmem:[#allocation5 + $0x5f8] sm:$0xf0]  ;;  %v4795_v30 = vld [vmem:[#allocation5 + $0x46c] sm:$0xf] }
  0xb6   :  { %1643 = vmatpush.bf16.msrb.mxu0 %v3417_v63  ;;  %v3993_v54 = vor.u32 %v4843_v42, %v3990_v43  ;;  %v4771_v63 = vld [vmem:[#allocation5 + $0x3ac] sm:$0xf] }
  0xb7   :  { %1592 = vmatpush.bf16.msra.mxu1 %v3781_v62  ;;  %v3849_v62 = vor.u32 %v4807_v51, %v3846_v52  ;;  %v4827_v37 = vld [vmem:[#allocation5 + $0x56c] sm:$0xf] }
  0xb8   :  { %1630 = vmatpush.bf16.msrb.mxu2 %v3289_v56  ;;  %v3574_v56 = vld [vmem:[#allocation5 + $0x2b8] sm:$0xf0]  ;;  %v4759_v43 = vld [vmem:[#allocation5 + $0x34c] sm:$0xf]  ;;  %v3929_v51 = vor.u32 %v4827_v37, %v3926_v38 }
  0xb9   :  { %1604 = vmatpush.bf16.msrb.mxu3 %v3925_v58  ;;  %v4839_v58 = vld [vmem:[#allocation5 + $0x5cc] sm:$0xf]  ;;  %v3577_v1 = vor.u32 %v4739_v55, %v3574_v56 }
  0xba   :  { %1644 = vmatpush.bf16.msrb.mxu0 %v3401_v12  ;;  %v3977_v5 = vor.u32 %v4839_v58, %v3974_v59  ;;  %v3705_v12 = vor.u32 %v4771_v63, %v3702_v2  ;;  %v4723_v52 = vld [vmem:[#allocation5 + $0x22c] sm:$0xf]  ;;  %v3910_v59 = vld [vmem:[#allocation5 + $0x558] sm:$0xf0] }
  0xbb   :  { %1593 = vmatpush.bf16.msra.mxu1 %v3765_v11  ;;  %v337_v11 = vperm.slane %v5357_v0, 0  ;;  %v4823_v58 = vld [vmem:[#allocation5 + $0x54c] sm:$0xf]  ;;  %v3638_v2 = vld [vmem:[#allocation5 + $0x338] sm:$0xf0] }
  0xbc   :  { %1631 = vmatpush.bf16.msrb.mxu2 %v3273_v6  ;;  %v4735_v6 = vld [vmem:[#allocation5 + $0x28c] sm:$0xf] }
  0xbd   :  { %1605 = vmatpush.bf16.msrb.mxu3 %v3909_v7  ;;  %v3558_v7 = vld [vmem:[#allocation5 + $0x298] sm:$0xf0]  ;;  %v1362_v21 = vpop.f32.mrf.mxu0  ;;  %v4755_v63 = vld [vmem:[#allocation5 + $0x32c] sm:$0xf] }
  0xbe   :  { %1645 = vmatpush.bf16.msrb.mxu0 %v3385_v27  ;;  %v3561_v15 = vor.u32 %v4735_v6, %v3558_v7  ;;  %v4763_v27 = vld [vmem:[#allocation5 + $0x36c] sm:$0xf]  ;;  %v1375_v32 = vpop.f32.mrf.mxu1  ;;  %v3494_v7 = vld [vmem:[#allocation5 + $0x218] sm:$0xf0] }
  0xbf   :  { %1594 = vmatpush.bf16.msra.mxu1 %v3749_v26  ;;  %v3817_v26 = vor.u32 %v4799_v17, %v3814_v18  ;;  %v4787_v3 = vld [vmem:[#allocation5 + $0x42c] sm:$0xf] }
  0xc0   :  { %1632 = vmatpush.bf16.msrb.mxu2 %v3257_v19  ;;  %v3961_v19 = vor.u32 %v4835_v8, %v3958_v10  ;;  %v4719_v6 = vld [vmem:[#allocation5 + $0x20c] sm:$0xf]  ;;  %v3769_v16 = vor.u32 %v4787_v3, %v3766_v4  ;;  %v5247_v3 = vmov 8.0  }
  0xc1   :  { %1606 = vmatpush.bf16.msrb.mxu3 %v3893_v22  ;;  %v1363_v22 = vadd.f32 %v1362_v21, %v337_v11  ;;  %v4819_v8 = vld [vmem:[#allocation5 + $0x52c] sm:$0xf]  ;;  %v3894_v11 = vld [vmem:[#allocation5 + $0x538] sm:$0xf0]  ;;  %v3497_v17 = vor.u32 %v4719_v6, %v3494_v7  ;;  %5024 = vrcp.f32 %v5247_v3  ;;  %v339_v6 = vperm.slane %v5357_v0, 2 }
  0xc2   :  { %1595 = vmatmul.bf16.vlgmr.msra.gmra.mxu1 %v5336_v34  ;;  %1646 = vmatpush.bf16.msrb.mxu0 %v3369_v49  ;;  %v4791_v49 = vld [vmem:[#allocation5 + $0x44c] sm:$0xf] }
  0xc3   :  { %1652 = vmatpush.bf16.msrb.mxu1 %v3609_v31  ;;  %v3798_v31 = vld [vmem:[#allocation5 + $0x478] sm:$0xf0]  ;;  %v4751_v18 = vld [vmem:[#allocation5 + $0x30c] sm:$0xf] }
  0xc4   :  { %1633 = vmatpush.bf16.msrb.mxu2 %v3241_v36  ;;  %v1376_v36 = vadd.f32 %v1375_v32, %v1363_v22  ;;  %v3801_v42 = vor.u32 %v4795_v30, %v3798_v31  ;;  %v4783_v21 = vld [vmem:[#allocation5 + $0x40c] sm:$0xf]  ;;  %v3750_v22 = vld [vmem:[#allocation5 + $0x418] sm:$0xf0] }
  0xc5   :  { %1607 = vmatpush.bf16.msrb.mxu3 %v3877_v41  ;;  %1647 = vmatmul.bf16.vlgmr.msrb.gmra.mxu0 %v5328_v9  ;;  %v3945_v9 = vor.u32 %v4831_v23, %v3942_v24  ;;  %v1388_v40 = vpop.f32.mrf.mxu2  ;;  %v3673_v41 = vor.u32 %v4763_v27, %v3670_v29  ;;  %v1364_v55 = vpop.f32.mrf.mxu0  ;;  %v4815_v24 = vld [vmem:[#allocation5 + $0x50c] sm:$0xf]  ;;  %v3753_v27 = vor.u32 %v4783_v21, %v3750_v22 }
  0xc6   :  { %1691 = vmatpush.bf16.msra.mxu0 %v3993_v54  ;;  %v3510_v54 = vld [vmem:[#allocation5 + $0x238] sm:$0xf0]  ;;  %v1377_v10 = vpop.f32.mrf.mxu1 }
  0xc7   :  { %1653 = vmatpush.bf16.msrb.mxu1 %v3593_v47  ;;  %1634 = vmatmul.bf16.vlgmr.msrb.gmra.mxu2 %v5322_v57  ;;  %v3542_v57 = vld [vmem:[#allocation5 + $0x278] sm:$0xf0]  ;;  %v1401_v46 = vpop.f32.mrf.mxu3 }
  0xc8   :  { %1678 = vmatpush.bf16.msra.mxu2 %v3865_v45  ;;  %1608 = vmatmul.bf16.vlgmr.msrb.gmra.mxu3 %v5338_v39  ;;  %v3545_v28 = vor.u32 %v4731_v20, %v3542_v57  ;;  %v1389_v45 = vadd.f32 %v1388_v40, %v1376_v36  ;;  %v3654_v47 = vld [vmem:[#allocation5 + $0x358] sm:$0xf0]  ;;  %v3897_v57 = vor.u32 %v4819_v8, %v3894_v11  ;;  %v338_v36 = vperm.slane %v5357_v0, 1  ;;  %v5025_v11 = vpop.eup %5024 }
  0xc9   :  { %1665 = vmatpush.bf16.msra.mxu3 %v3737_v44  ;;  %v3529_v44 = vor.u32 %v4727_v33, %v3526_v35  ;;  %vm1746_vm1 = vweird.f32 %v5025_v11 }
  0xca   :  { %1692 = vmatpush.bf16.msra.mxu0 %v3977_v5  ;;  %v1402_v56 = vadd.f32 %v1401_v46, %v1389_v45  ;;  %v3913_v5 = vor.u32 %v4823_v58, %v3910_v59 }
  0xcb   :  { %1654 = vmatpush.bf16.msrb.mxu1 %v3577_v1  ;;  %v3513_v1 = vor.u32 %v4723_v52, %v3510_v54 }
  0xcc   :  { %1679 = vmatpush.bf16.msra.mxu2 %v3849_v62  ;;  %v3785_v62 = vor.u32 %v4791_v49, %v3782_v50 }
  0xcd   :  { %1666 = vmatpush.bf16.msra.mxu3 %v3721_v61  ;;  %v3657_v61 = vor.u32 %v4759_v43, %v3654_v47  ;;  %v1390_v14 = vpop.f32.mrf.mxu2 }
  0xce   :  { %1693 = vmatpush.bf16.msra.mxu0 %v3961_v19  ;;  %v3622_v19 = vld [vmem:[#allocation5 + $0x318] sm:$0xf0] }
  0xcf   :  { %1655 = vmatpush.bf16.msrb.mxu1 %v3561_v15  ;;  %v3641_v15 = vor.u32 %v4755_v63, %v3638_v2  ;;  %v1403_v20 = vpop.f32.mrf.mxu3 }
  0xd0   :  { %1680 = vmatpush.bf16.msra.mxu2 %v3833_v13  ;;  %v4006_v13 = vld [vmem:[#allocation5 + $0x618] sm:$0xf0] }
  0xd1   :  { %1667 = vmatpush.bf16.msra.mxu3 %v3705_v12  ;;  %v4847_v12 = vld [vmem:[#allocation5 + $0x60c] sm:$0xf] }
  0xd2   :  { %1694 = vmatpush.bf16.msra.mxu0 %v3945_v9  ;;  %v4009_v23 = vor.u32 %v4847_v12, %v4006_v13 }
  0xd3   :  { %1656 = vmatpush.bf16.msrb.mxu1 %v3545_v28 }
  0xd4   :  { %1681 = vmatpush.bf16.msra.mxu2 %v3817_v26  ;;  %v3625_v26 = vor.u32 %v4751_v18, %v3622_v19 }
  0xd5   :  { %1668 = vmatpush.bf16.msra.mxu3 %v3689_v25  ;;  %v3878_v25 = vld [vmem:[#allocation5 + $0x518] sm:$0xf0]  ;;  %v1440_v29 = vpop.f32.mrf.mxu2 }
  0xd6   :  { %1695 = vmatpush.bf16.msra.mxu0 %v3929_v51  ;;  %v3881_v28 = vor.u32 %v4815_v24, %v3878_v25 }
  0xd7   :  { %1657 = vmatpush.bf16.msrb.mxu1 %v3529_v44 }
  0xd8   :  { %1682 = vmatpush.bf16.msra.mxu2 %v3801_v42 }
  0xd9   :  { %1669 = vmatpush.bf16.msra.mxu3 %v3673_v41 }
  0xda   :  { %1696 = vmatpush.bf16.msra.mxu0 %v3913_v5 }
  0xdb   :  { %1658 = vmatpush.bf16.msrb.mxu1 %v3513_v1 }
  0xdc   :  { %1683 = vmatpush.bf16.msra.mxu2 %v3785_v62 }
  0xdd   :  { %1670 = vmatpush.bf16.msra.mxu3 %v3657_v61  ;;  %v1442_v32 = vpop.f32.mrf.mxu2 }
  0xde   :  { %1697 = vmatpush.bf16.msra.mxu0 %v3897_v57  ;;  %v1414_v30 = vpop.f32.mrf.mxu0 }
  0xdf   :  { %1659 = vmatpush.bf16.msrb.mxu1 %v3497_v17  ;;  %v1415_v31 = vadd.f32 %v1414_v30, %v1402_v56  ;;  %v1427_v9 = vpop.f32.mrf.mxu1 }
  0xe0   :  { %1684 = vmatpush.bf16.msra.mxu2 %v3769_v16  ;;  %v1742_v16 = vmul.f32 8.0, %v5025_v11 }
  0xe1   :  { %1671 = vmatpush.bf16.msra.mxu3 %v3641_v15  ;;  %v1428_v33 = vadd.f32 %v1427_v9, %v1415_v31 }
  0xe2   :  { %1660 = vmatmul.bf16.vlgmr.msrb.gmra.mxu1 %v5320_v53  ;;  %1698 = vmatpush.bf16.msra.mxu0 %v3881_v28  ;;  %v1743_v57 = vsub.f32 1.0, %v1742_v16 }
  0xe3   :  { %1711 = vmatpush.bf16.msra.mxu1 %v4009_v23  ;;  %v5367_v35 = vadd.f32 %v1440_v29, %v1428_v33 }
  0xe4   :  { %1685 = vmatpush.bf16.msra.mxu2 %v3753_v27  ;;  %v1744_v24 = vmul.f32 %v5025_v11, %v1743_v57  ;;  %v4112_v57 = vld [vmem:[#allocation11 + $0xc0] sm:$0xf] }
  0xe5   :  { %1672 = vmatpush.bf16.msra.mxu3 %v3625_v26  ;;  %1699 = vmatmul.bf16.vlgmr.msra.gmra.mxu0 %v5338_v39  ;;  %v1717_v10 = vrot.slane %v5367_v35, 4 }
  0xe6   :  { %v1416_v37 = vpop.f32.mrf.mxu0  ;;  %v1745_v31 = vadd.f32 %v5025_v11, %v1744_v24 }
  0xe7   :  { %1686 = vmatmul.bf16.vlgmr.msra.gmra.mxu2 %v5336_v34  ;;  %v1453_v53 = vpop.f32.mrf.mxu3  ;;  %v1718_v14 = vadd.f32 %v1717_v10, %v5367_v35  ;;  %v4384_v10 = vld [vmem:[#allocation11 + $0x2e0] sm:$0xf] }
  0xe8   :  { %1673 = vmatmul.bf16.vlgmr.msra.gmra.mxu3 %v5324_v60  ;;  %v1454_v38 = vadd.f32 %v1453_v53, %v338_v36  ;;  %v1429_v60 = vpop.f32.mrf.mxu1 }
  0xe9   :  { %v1719_v19 = vrot.slane %v1718_v14, 2 }
  0xea   :  { %v1466_v40 = vpop.f32.mrf.mxu2 }
  0xeb   :  { %v1467_v34 = vadd.f32 %v1466_v40, %v1454_v38  ;;  %v1720_v23 = vadd.f32 %v1719_v19, %v1718_v14  ;;  %v5381_v38 = vsel %vm1746_vm1, %v5025_v11, %v1745_v31  ;;  %v4512_v14 = vld [vmem:[#allocation11 + $0x3e0] sm:$0xf] }
  0xec   :  { %v4496_v31 = vld [vmem:[#allocation11 + $0x3c0] sm:$0xf] }
  0xed   :  { %v1721_v28 = vrot.slane %v1720_v23, 1 }
  0xef   :  { %v1455_v41 = vpop.f32.mrf.mxu3  ;;  %v1722_v53 = vadd.f32 %v1721_v28, %v1720_v23 }
  0xf1   :  { %v5388_v41 = vmul.f32 %v5381_v38, %v1722_v53 }
  0xf2   :  { %4013 = vmatmul.msk.bf16.vlgmr.msra.gmra.mxu1 %vm1349_vm0, %v5332_v48  ;;  %v1468_v39 = vpop.f32.mrf.mxu2  ;;  %vm1844_vm0 = vcmask 1041408  }
  0xfe   :  { %v1479_v42 = vpop.f32.mrf.mxu0 }
  0xff   :  { %v1480_v43 = vadd.f32 %v1479_v42, %v1467_v34  ;;  %v1492_v44 = vpop.f32.mrf.mxu1 }
 0x101   :  { %v1493_v45 = vadd.f32 %v1492_v44, %v1480_v43 }
 0x106   :  { %v1481_v49 = vpop.f32.mrf.mxu0 }
 0x107   :  { %v1505_v46 = vpop.f32.mrf.mxu3  ;;  %v1494_v52 = vpop.f32.mrf.mxu1 }
 0x108   :  { %v1506_v47 = vadd.f32 %v1505_v46, %v1493_v45  ;;  %v1752_v46 = vsub.f32 %v5367_v35, %v5388_v41 }
 0x10a   :  { %v1518_v50 = vpop.f32.mrf.mxu2 }
 0x10b   :  { %v1519_v51 = vadd.f32 %v1518_v50, %v1506_v47 }
 0x10f   :  { %v1507_v54 = vpop.f32.mrf.mxu3 }
 0x110   :  { %v340_v54 = vperm.slane %v5357_v0, 3  ;;  %v4912_v0 = vld [vmem:[#allocation11 + $0x1ec] sm:$0xf0] }
 0x112   :  { %v1520_v55 = vpop.f32.mrf.mxu2 }
 0x117   :  { %v1531_v56 = vpop.f32.mrf.mxu3 }
 0x118   :  { %v5372_v48 = vadd.f32 %v1531_v56, %v1519_v51  ;;  %v1756_v51 = vmul.f32 %v1752_v46, %v1752_v46  ;;  %v4904_v46 = vld [vmem:[#allocation11 + $0x1ac] sm:$0xf0] }
 0x11a   :  { %v1723_v8 = vrot.slane %v5372_v48, 4 }
 0x11c   :  { %v1724_v13 = vadd.f32 %v1723_v8, %v5372_v48  ;;  %v4256_v8 = vld [vmem:[#allocation11 + $0x1e0] sm:$0xf] }
 0x11e   :  { %v1570_v59 = vpop.f32.mrf.mxu0  ;;  %v1725_v18 = vrot.slane %v1724_v13, 2 }
 0x11f   :  { %v1533_v58 = vpop.f32.mrf.mxu3  ;;  %v1544_v61 = vpop.f32.mrf.mxu1 }
 0x120   :  { %v1545_v12 = vadd.f32 %v1544_v61, %v339_v6  ;;  %v1726_v22 = vadd.f32 %v1725_v18, %v1724_v13  ;;  %v1760_v58 = vrot.slane %v1756_v51, 4  ;;  %v4944_v13 = vld [vmem:[#allocation11 + $0x2ec] sm:$0xf0] }
 0x122   :  { %v1727_v27 = vrot.slane %v1726_v22, 1 }
 0x124   :  { %v1728_v36 = vadd.f32 %v1727_v27, %v1726_v22  ;;  %v4368_v27 = vld [vmem:[#allocation11 + $0x2c0] sm:$0xf] }
 0x126   :  { %v1572_v63 = vpop.f32.mrf.mxu0  ;;  %v5385_v34 = vmul.f32 %v5381_v38, %v1728_v36 }
 0x127   :  { %v1546_v2 = vpop.f32.mrf.mxu1 }
 0x128   :  { %v1753_v45 = vsub.f32 %v5372_v48, %v5385_v34  ;;  %v1761_v2 = vadd.f32 %v1760_v58, %v1756_v51 }
 0x12a   :  { %v1583_v1 = vpop.f32.mrf.mxu2  ;;  %v1757_v50 = vmul.f32 %v1753_v45, %v1753_v45  ;;  %v1762_v19 = vrot.slane %v1761_v2, 2  ;;  %v4224_v45 = vld [vmem:[#allocation11 + $0x1a0] sm:$0xf] }
 0x12b   :  { %v1557_v62 = vpop.f32.mrf.mxu3  ;;  %v4225_v51 = vor.u32 %v4904_v46, %v4224_v45  ;;  %v4304_v45 = vld [vmem:[#allocation11 + $0x240] sm:$0xf] }
 0x12c   :  { %v1558_v17 = vadd.f32 %v1557_v62, %v1545_v12  ;;  %v1766_v56 = vrot.slane %v1757_v50, 4  ;;  %v4257_v12 = vor.u32 %v4912_v0, %v4256_v8  ;;  %v4932_v8 = vld [vmem:[#allocation11 + $0x28c] sm:$0xf0] }
 0x12e   :  { %v1622_v5 = vpop.f32.mrf.mxu0  ;;  %v1571_v21 = vadd.f32 %v1570_v59, %v1558_v17  ;;  %v4385_v17 = vor.u32 %v4944_v13, %v4384_v10  ;;  %2690 = vmatpush.bf16.msrb.mxu1 %v4257_v12  ;;  %v4464_v13 = vld [vmem:[#allocation11 + $0x380] sm:$0xf] }
 0x130   :  { %v1584_v25 = vadd.f32 %v1583_v1, %v1571_v21  ;;  %v1767_v1 = vadd.f32 %v1766_v56, %v1757_v50  ;;  %v4876_v21 = vld [vmem:[#allocation11 + $0xcc] sm:$0xf0]  ;;  %2703 = vmatpush.bf16.msrb.mxu2 %v4385_v17 }
 0x131   :  { %v4113_v24 = vor.u32 %v4876_v21, %v4112_v57  ;;  %v4968_v56 = vld [vmem:[#allocation11 + $0x3ac] sm:$0xf0]  ;;  %v4064_v57 = vld [vmem:[#allocation11 + $0x60] sm:$0xf] }
 0x132   :  { %v1585_v7 = vpop.f32.mrf.mxu2  ;;  %v1768_v16 = vrot.slane %v1767_v1, 2  ;;  %v4964_v17 = vld [vmem:[#allocation11 + $0x38c] sm:$0xf0] }
 0x133   :  { %v1559_v4 = vpop.f32.mrf.mxu3  ;;  %v4864_v21 = vld [vmem:[#allocation11 + $0x6c] sm:$0xf0] }
 0x134   :  { %v4128_v4 = vld [vmem:[#allocation11 + $0xe0] sm:$0xf] }
 0x136   :  { %v1624_v15 = vpop.f32.mrf.mxu0 }
 0x137   :  { %v4976_v15 = vld [vmem:[#allocation11 + $0x3ec] sm:$0xf0] }
 0x138   :  { %v4513_v18 = vor.u32 %v4976_v15, %v4512_v14 }
 0x13a   :  { %2716 = vmatpush.bf16.msrb.mxu0 %v4513_v18 }
 0x13f   :  { %v1596_v20 = vpop.f32.mrf.mxu1 }
 0x140   :  { %v1597_v29 = vadd.f32 %v1596_v20, %v1584_v25  ;;  %v4240_v25 = vld [vmem:[#allocation11 + $0x1c0] sm:$0xf] }
 0x142   :  { %v1648_v26 = vpop.f32.mrf.mxu0 }
 0x147   :  { %v1598_v30 = vpop.f32.mrf.mxu1 }
 0x148   :  { %v4940_v30 = vld [vmem:[#allocation11 + $0x2cc] sm:$0xf0] }
 0x149   :  { %v4369_v53 = vor.u32 %v4940_v30, %v4368_v27  ;;  %v4960_v30 = vld [vmem:[#allocation11 + $0x36c] sm:$0xf0] }
 0x14a   :  { %v1635_v33 = vpop.f32.mrf.mxu2  ;;  %v1650_v40 = vpop.f32.mrf.mxu0 }
 0x14b   :  { %v1609_v9 = vpop.f32.mrf.mxu3  ;;  %v1636_v61 = vadd.f32 %v1635_v33, %v340_v54  ;;  %2704 = vmatpush.bf16.msrb.mxu2 %v4369_v53  ;;  %v4480_v54 = vld [vmem:[#allocation11 + $0x3a0] sm:$0xf] }
 0x14c   :  { %v1610_v32 = vadd.f32 %v1609_v9, %v1597_v29  ;;  %v4972_v9 = vld [vmem:[#allocation11 + $0x3cc] sm:$0xf0]  ;;  %v4048_v53 = vld [vmem:[#allocation11 + $0x40] sm:$0xf] }
 0x14d   :  { %v1649_v6 = vadd.f32 %v1648_v26, %v1636_v61  ;;  %v4908_v26 = vld [vmem:[#allocation11 + $0x1cc] sm:$0xf0] }
 0x14e   :  { %v5379_v37 = vadd.f32 %v1622_v5, %v1610_v32  ;;  %v4880_v5 = vld [vmem:[#allocation11 + $0xec] sm:$0xf0]  ;;  %v4241_v29 = vor.u32 %v4908_v26, %v4240_v25  ;;  %v1769_v32 = vadd.f32 %v1768_v16, %v1767_v1  ;;  %v4080_v1 = vld [vmem:[#allocation11 + $0x80] sm:$0xf] }
 0x14f   :  { %v4129_v7 = vor.u32 %v4880_v5, %v4128_v4  ;;  %v4208_v4 = vld [vmem:[#allocation11 + $0x180] sm:$0xf] }
 0x150   :  { %v1729_v60 = vrot.slane %v5379_v37, 4  ;;  %2691 = vmatpush.bf16.msrb.mxu1 %v4241_v29  ;;  %v1770_v58 = vrot.slane %v1769_v32, 1  ;;  %v4320_v25 = vld [vmem:[#allocation11 + $0x260] sm:$0xf] }
 0x151   :  { %2677 = vmatpush.bf16.msrb.mxu3 %v4129_v7  ;;  %v4336_v7 = vld [vmem:[#allocation11 + $0x280] sm:$0xf] }
 0x152   :  { %v1730_v39 = vadd.f32 %v1729_v60, %v5379_v37  ;;  %v1637_v44 = vpop.f32.mrf.mxu2  ;;  %v4497_v60 = vor.u32 %v4972_v9, %v4496_v31  ;;  %v1771_v15 = vadd.f32 %v1770_v58, %v1769_v32  ;;  %v4448_v29 = vld [vmem:[#allocation11 + $0x360] sm:$0xf] }
 0x153   :  { %v1611_v42 = vpop.f32.mrf.mxu3 }
 0x154   :  { %v1731_v43 = vrot.slane %v1730_v39, 2  ;;  %v4872_v42 = vld [vmem:[#allocation11 + $0xac] sm:$0xf0]  ;;  %2717 = vmatpush.bf16.msrb.mxu0 %v4497_v60  ;;  %2692 = vmatpush.bf16.msrb.mxu1 %v4225_v51  ;;  %v1785_v9 = vmul.f32 %v1771_v15, %v5381_v38  ;;  %v4016_v15 = vld [vmem:[#allocation11] sm:$0xf] }
 0x155   :  { %2678 = vmatpush.bf16.msrb.mxu3 %v4113_v24  ;;  %v4896_v24 = vld [vmem:[#allocation11 + $0x16c] sm:$0xf0] }
 0x156   :  { %v1732_v47 = vadd.f32 %v1731_v43, %v1730_v39  ;;  %v4096_v39 = vld [vmem:[#allocation11 + $0xa0] sm:$0xf]  ;;  %v4860_v60 = vld [vmem:[#allocation11 + $0x4c] sm:$0xf0] }
 0x157   :  { %v4097_v44 = vor.u32 %v4872_v42, %v4096_v39  ;;  %v4049_v42 = vor.u32 %v4860_v60, %v4048_v53  ;;  %v4956_v51 = vld [vmem:[#allocation11 + $0x34c] sm:$0xf0] }
 0x158   :  { %v1733_v49 = vrot.slane %v1732_v47, 1 }
 0x159   :  { %2679 = vmatpush.bf16.msrb.mxu3 %v4097_v44  ;;  %v4892_v44 = vld [vmem:[#allocation11 + $0x14c] sm:$0xf0] }
 0x15a   :  { %v1734_v52 = vadd.f32 %v1733_v49, %v1732_v47  ;;  %v4352_v47 = vld [vmem:[#allocation11 + $0x2a0] sm:$0xf]  ;;  %v1763_v49 = vadd.f32 %v1762_v19, %v1761_v2  ;;  %v4900_v2 = vld [vmem:[#allocation11 + $0x18c] sm:$0xf0] }
 0x15b   :  { %v4209_v12 = vor.u32 %v4900_v2, %v4208_v4  ;;  %v4888_v4 = vld [vmem:[#allocation11 + $0x12c] sm:$0xf0] }
 0x15c   :  { %v5397_v55 = vmul.f32 %v5381_v38, %v1734_v52  ;;  %v4936_v52 = vld [vmem:[#allocation11 + $0x2ac] sm:$0xf0]  ;;  %v1764_v14 = vrot.slane %v1763_v49, 1 }
 0x15d   :  { %v4353_v61 = vor.u32 %v4936_v52, %v4352_v47  ;;  %2693 = vmatpush.bf16.msrb.mxu1 %v4209_v12 }
 0x15e   :  { %v1754_v59 = vsub.f32 %v5379_v37, %v5397_v55  ;;  %v1765_v31 = vadd.f32 %v1764_v14, %v1763_v49  ;;  %v4924_v49 = vld [vmem:[#allocation11 + $0x24c] sm:$0xf0] }
 0x15f   :  { %v1661_v62 = vpop.f32.mrf.mxu1  ;;  %2705 = vmatpush.bf16.msrb.mxu2 %v4353_v61  ;;  %v4032_v61 = vld [vmem:[#allocation11 + $0x20] sm:$0xf] }
 0x160   :  { %v1758_v63 = vmul.f32 %v1754_v59, %v1754_v59  ;;  %v1662_v22 = vadd.f32 %v1661_v62, %v1649_v6  ;;  %v4481_v62 = vor.u32 %v4968_v56, %v4480_v54  ;;  %v1784_v52 = vmul.f32 %v1765_v31, %v5381_v38 }
 0x161   :  { %v5407_v54 = vadd.f32 1e-05, %v1785_v9  ;;  %v4305_v56 = vor.u32 %v4924_v49, %v4304_v45  ;;  %v4114_v45 = vld [vmem:[#allocation11 + $0xd0] sm:$0xf0] }
 0x162   :  { %v1772_v3 = vrot.slane %v1758_v63, 4  ;;  %v1700_v11 = vpop.f32.mrf.mxu0  ;;  %2718 = vmatpush.bf16.msrb.mxu0 %v4481_v62  ;;  %v4856_v62 = vld [vmem:[#allocation11 + $0x2c] sm:$0xf0]  ;;  %v5410_v12 = vadd.f32 1e-05, %v1784_v52 }
 0x163   :  { %5026 = vrsqrt.f32 %v5407_v54  ;;  %v4242_v49 = vld [vmem:[#allocation11 + $0x1d0] sm:$0xf0]  ;;  %vm1809_vm3 = vweird.f32 %v5407_v54 }
 0x164   :  { %v1773_v20 = vadd.f32 %v1772_v3, %v1758_v63  ;;  %v4868_v3 = vld [vmem:[#allocation11 + $0x8c] sm:$0xf0]  ;;  %vm1799_vm12 = vweird.f32 %v5410_v12 }
 0x165   :  { %v4081_v6 = vor.u32 %v4868_v3, %v4080_v1  ;;  %v4033_v1 = vor.u32 %v4856_v62, %v4032_v61  ;;  %v4160_v3 = vld [vmem:[#allocation11 + $0x120] sm:$0xf]  ;;  %v4970_v61 = vld [vmem:[#allocation11 + $0x3c4] sm:$0xf]  ;;  %v4498_v62 = vld [vmem:[#allocation11 + $0x3d0] sm:$0xf0] }
 0x166   :  { %v1774_v40 = vrot.slane %v1773_v20, 2  ;;  %v4161_v2 = vor.u32 %v4888_v4, %v4160_v3  ;;  %v4098_v3 = vld [vmem:[#allocation11 + $0xb0] sm:$0xf0]  ;;  %v4902_v4 = vld [vmem:[#allocation11 + $0x1a4] sm:$0xf] }
 0x167   :  { %v1663_v23 = vpop.f32.mrf.mxu1  ;;  %2680 = vmatpush.bf16.msrb.mxu3 %v4081_v6 }
 0x168   :  { %v1775_v63 = vadd.f32 %v1774_v40, %v1773_v20  ;;  %v4465_v20 = vor.u32 %v4964_v17, %v4464_v13  ;;  %v4192_v23 = vld [vmem:[#allocation11 + $0x160] sm:$0xf] }
 0x169   :  { %v4193_v27 = vor.u32 %v4896_v24, %v4192_v23  ;;  %v4144_v17 = vld [vmem:[#allocation11 + $0x100] sm:$0xf]  ;;  %v4916_v23 = vld [vmem:[#allocation11 + $0x20c] sm:$0xf0]  ;;  %v5420_v52 = vpop.eup %5026 }
 0x16a   :  { %v1687_v36 = vpop.f32.mrf.mxu2  ;;  %v1702_v50 = vpop.f32.mrf.mxu0  ;;  %v1776_v18 = vrot.slane %v1775_v63, 1  ;;  %2719 = vmatpush.bf16.msrb.mxu0 %v4465_v20  ;;  %v4884_v20 = vld [vmem:[#allocation11 + $0x10c] sm:$0xf0]  ;;  %v4400_v24 = vld [vmem:[#allocation11 + $0x300] sm:$0xf]  ;;  %vm1810_vm2 = vweird.f32 %v5420_v52 }
 0x16b   :  { %v1674_v28 = vpop.f32.mrf.mxu3  ;;  %2694 = vmatpush.bf16.msrb.mxu1 %v4193_v27  ;;  %v4432_v50 = vld [vmem:[#allocation11 + $0x340] sm:$0xf]  ;;  %vm1811_vm5 = vmor %vm1809_vm3, %vm1810_vm2 }
 0x16c   :  { %v1675_v33 = vadd.f32 %v1674_v28, %v1662_v22  ;;  %v4065_v22 = vor.u32 %v4864_v21, %v4064_v57  ;;  %v4928_v28 = vld [vmem:[#allocation11 + $0x26c] sm:$0xf0]  ;;  %v1777_v40 = vadd.f32 %v1776_v18, %v1775_v63  ;;  %v4433_v58 = vor.u32 %v4956_v51, %v4432_v50  ;;  %v4272_v57 = vld [vmem:[#allocation11 + $0x200] sm:$0xf]  ;;  %v4938_v50 = vld [vmem:[#allocation11 + $0x2c4] sm:$0xf] }
 0x16d   :  { %v4321_v32 = vor.u32 %v4928_v28, %v4320_v25  ;;  %v4948_v25 = vld [vmem:[#allocation11 + $0x30c] sm:$0xf0]  ;;  %v4878_v28 = vld [vmem:[#allocation11 + $0xe4] sm:$0xf]  ;;  %v4370_v51 = vld [vmem:[#allocation11 + $0x2d0] sm:$0xf0] }
 0x16e   :  { %v1688_v43 = vadd.f32 %v1687_v36, %v1675_v33  ;;  %2681 = vmatpush.bf16.msrb.mxu3 %v4065_v22  ;;  %v4449_v33 = vor.u32 %v4960_v30, %v4448_v29  ;;  %v1786_v63 = vmul.f32 %v1777_v40, %v5381_v38  ;;  %v4145_v22 = vor.u32 %v4884_v20, %v4144_v17  ;;  %v4130_v29 = vld [vmem:[#allocation11 + $0xf0] sm:$0xf0]  ;;  %v4910_v30 = vld [vmem:[#allocation11 + $0x1e4] sm:$0xf] }
 0x16f   :  { %v1713_v5 = vpop.f32.mrf.mxu1  ;;  %v4401_v27 = vor.u32 %v4948_v25, %v4400_v24  ;;  %v4133_v9 = vor.u32 %v4878_v28, %v4130_v29  ;;  %v4974_v40 = vld [vmem:[#allocation11 + $0x3e4] sm:$0xf]  ;;  %v4210_v25 = vld [vmem:[#allocation11 + $0x190] sm:$0xf0] }
 0x170   :  { %v1701_v59 = vadd.f32 %v1700_v11, %v1688_v43  ;;  %v4337_v11 = vor.u32 %v4932_v8, %v4336_v7  ;;  %v4176_v43 = vld [vmem:[#allocation11 + $0x140] sm:$0xf]  ;;  %2720 = vmatpush.bf16.msrb.mxu0 %v4449_v33  ;;  %v4920_v7 = vld [vmem:[#allocation11 + $0x22c] sm:$0xf0]  ;;  %v5415_v18 = vadd.f32 1e-05, %v1786_v63  ;;  %v4501_v63 = vor.u32 %v4970_v61, %v4498_v62 }
 0x171   :  { %v4177_v47 = vor.u32 %v4892_v44, %v4176_v43  ;;  %v4416_v8 = vld [vmem:[#allocation11 + $0x320] sm:$0xf]  ;;  %v4942_v33 = vld [vmem:[#allocation11 + $0x2e4] sm:$0xf] }
 0x172   :  { %v5401_v0 = vadd.f32 %v1713_v5, %v1701_v59  ;;  %v1689_v16 = vpop.f32.mrf.mxu2  ;;  %2706 = vmatpush.bf16.msrb.mxu2 %v4337_v11  ;;  %2682 = vmatpush.bf16.msrb.mxu3 %v4049_v42  ;;  %v4288_v5 = vld [vmem:[#allocation11 + $0x220] sm:$0xf]  ;;  %v4874_v42 = vld [vmem:[#allocation11 + $0xc4] sm:$0xf]  ;;  %5028 = vrsqrt.f32 %v5415_v18  ;;  %vm1819_vm6 = vweird.f32 %v5415_v18 }
 0x173   :  { %v1676_v10 = vpop.f32.mrf.mxu3  ;;  %2695 = vmatpush.bf16.msrb.mxu1 %v4177_v47  ;;  %v4289_v11 = vor.u32 %v4920_v7, %v4288_v5  ;;  %v4852_v16 = vld [vmem:[#allocation11 + $0xc] sm:$0xf0]  ;;  %v4117_v47 = vor.u32 %v4874_v42, %v4114_v45  ;;  %5030 = vrsqrt.f32 %v5410_v12  ;;  %v4934_v7 = vld [vmem:[#allocation11 + $0x2a4] sm:$0xf]  ;;  %v4194_v45 = vld [vmem:[#allocation11 + $0x170] sm:$0xf0] }
 0x174   :  { %v1735_v19 = vrot.slane %v5401_v0, 4  ;;  %2721 = vmatpush.bf16.msrb.mxu0 %v4433_v58  ;;  %v4952_v10 = vld [vmem:[#allocation11 + $0x32c] sm:$0xf0]  ;;  %v4866_v20 = vld [vmem:[#allocation11 + $0x84] sm:$0xf] }
 0x175   :  { %v4417_v13 = vor.u32 %v4952_v10, %v4416_v8  ;;  %v1804_v8 = vmul.f32 %v5420_v52, %v5407_v54  ;;  %v4858_v62 = vld [vmem:[#allocation11 + $0x44] sm:$0xf] }
 0x176   :  { %v1736_v26 = vadd.f32 %v1735_v19, %v5401_v0  ;;  %2707 = vmatpush.bf16.msrb.mxu2 %v4321_v32  ;;  %2683 = vmatpush.bf16.msrb.mxu3 %v4033_v1  ;;  %v4017_v19 = vor.u32 %v4852_v16, %v4016_v15  ;;  %v4258_v32 = vld [vmem:[#allocation11 + $0x1f0] sm:$0xf0]  ;;  %v4870_v1 = vld [vmem:[#allocation11 + $0xa4] sm:$0xf] }
 0x177   :  { %v1715_v39 = vpop.f32.mrf.mxu1  ;;  %2696 = vmatpush.bf16.msrb.mxu1 %v4161_v2  ;;  %v4261_v53 = vor.u32 %v4910_v30, %v4258_v32  ;;  %v4226_v2 = vld [vmem:[#allocation11 + $0x1b0] sm:$0xf0]  ;;  %v1805_v28 = vmul.f32 %v5420_v52, %v1804_v8 }
 0x178   :  { %v1737_v36 = vrot.slane %v1736_v26, 2  ;;  %2722 = vmatpush.bf16.msrb.mxu0 %v4417_v13  ;;  %v4514_v39 = vld [vmem:[#allocation11 + $0x3f0] sm:$0xf0]  ;;  %v4229_v10 = vor.u32 %v4902_v4, %v4226_v2  ;;  %v4966_v13 = vld [vmem:[#allocation11 + $0x3a4] sm:$0xf] }
 0x179   :  { %v4517_v44 = vor.u32 %v4974_v40, %v4514_v39  ;;  %v4482_v15 = vld [vmem:[#allocation11 + $0x3b0] sm:$0xf0]  ;;  %v4894_v39 = vld [vmem:[#allocation11 + $0x164] sm:$0xf] }
 0x17a   :  { %v1738_v46 = vadd.f32 %v1737_v36, %v1736_v26  ;;  %2708 = vmatpush.bf16.msrb.mxu2 %v4305_v56  ;;  %2684 = vmatpush.bf16.msrb.mxu3 %v4017_v19  ;;  %v4273_v26 = vor.u32 %v4916_v23, %v4272_v57  ;;  %v4386_v36 = vld [vmem:[#allocation11 + $0x2f0] sm:$0xf0]  ;;  %v4485_v19 = vor.u32 %v4966_v13, %v4482_v15  ;;  %v4922_v4 = vld [vmem:[#allocation11 + $0x244] sm:$0xf] }
 0x17b   :  { %2697 = vmatpush.bf16.msrb.mxu1 %v4145_v22  ;;  %v4389_v60 = vor.u32 %v4942_v33, %v4386_v36  ;;  %v4082_v57 = vld [vmem:[#allocation11 + $0x90] sm:$0xf0]  ;;  %v5426_v22 = vpop.eup %5028  ;;  %v4854_v13 = vld [vmem:[#allocation11 + $0x24] sm:$0xf] }
 0x17c   :  { %v1739_v59 = vrot.slane %v1738_v46, 1  ;;  %2723 = vmatpush.bf16.msrb.mxu0 %v4401_v27  ;;  %v4085_v24 = vor.u32 %v4866_v20, %v4082_v57  ;;  %v5428_v27 = vpop.eup %5030  ;;  %v4338_v30 = vld [vmem:[#allocation11 + $0x290] sm:$0xf0]  ;;  %v4918_v20 = vld [vmem:[#allocation11 + $0x224] sm:$0xf]  ;;  %vm1820_vm4 = vweird.f32 %v5426_v22 }
 0x17d   :  { %v4066_v40 = vld [vmem:[#allocation11 + $0x70] sm:$0xf0]  ;;  %v1794_v42 = vmul.f32 %v5428_v27, %v5410_v12  ;;  %vm1800_vm8 = vweird.f32 %v5428_v27  ;;  %vm1821_vm9 = vmor %vm1819_vm6, %vm1820_vm4 }
 0x17e   :  { %v1740_v6 = vadd.f32 %v1739_v59, %v1738_v46  ;;  %2709 = vmatpush.bf16.msrb.mxu2 %v4289_v11  ;;  %2729 = vmatpush.bf16.msra.mxu3 %v4133_v9  ;;  %v4906_v46 = vld [vmem:[#allocation11 + $0x1c4] sm:$0xf]  ;;  %v4373_v59 = vor.u32 %v4938_v50, %v4370_v51  ;;  %v4354_v11 = vld [vmem:[#allocation11 + $0x2b0] sm:$0xf0]  ;;  %v4197_v50 = vor.u32 %v4894_v39, %v4194_v45  ;;  %vm1801_vm15 = vmor %vm1799_vm12, %vm1800_vm8 }
 0x17f   :  { %2742 = vmatpush.bf16.msra.mxu1 %v4261_v53  ;;  %v4245_v58 = vor.u32 %v4906_v46, %v4242_v49  ;;  %v4357_v17 = vor.u32 %v4934_v7, %v4354_v11  ;;  %v4466_v9 = vld [vmem:[#allocation11 + $0x390] sm:$0xf0]  ;;  %v1814_v53 = vmul.f32 %v5426_v22, %v5415_v18  ;;  %v4926_v46 = vld [vmem:[#allocation11 + $0x264] sm:$0xf]  ;;  %v1806_v49 = vmul.f32 0.5, %v1805_v28 }
 0x180   :  { %v5413_v14 = vmul.f32 %v5381_v38, %v1740_v6  ;;  %2768 = vmatpush.bf16.msra.mxu0 %v4517_v44  ;;  %v4101_v6 = vor.u32 %v4870_v1, %v4098_v3  ;;  %v4890_v1 = vld [vmem:[#allocation11 + $0x144] sm:$0xf]  ;;  %v4178_v3 = vld [vmem:[#allocation11 + $0x150] sm:$0xf0] }
 0x181   :  { %v4306_v2 = vld [vmem:[#allocation11 + $0x250] sm:$0xf0]  ;;  %v4954_v7 = vld [vmem:[#allocation11 + $0x344] sm:$0xf] }
 0x182   :  { %v1755_v21 = vsub.f32 %v5401_v0, %v5413_v14  ;;  %2710 = vmatpush.bf16.msrb.mxu2 %v4273_v26  ;;  %2730 = vmatpush.bf16.msra.mxu3 %v4117_v47  ;;  %v4930_v26 = vld [vmem:[#allocation11 + $0x284] sm:$0xf]  ;;  %v4322_v47 = vld [vmem:[#allocation11 + $0x270] sm:$0xf0]  ;;  %v4309_v11 = vor.u32 %v4922_v4, %v4306_v2 }
 0x183   :  { %2743 = vmatpush.bf16.msra.mxu1 %v4245_v58  ;;  %v4341_v33 = vor.u32 %v4930_v26, %v4338_v30  ;;  %v4325_v51 = vor.u32 %v4926_v46, %v4322_v47  ;;  %v4450_v58 = vld [vmem:[#allocation11 + $0x370] sm:$0xf0]  ;;  %v1807_v26 = vsub.f32 1.5, %v1806_v49 }
 0x184   :  { %v1759_v31 = vmul.f32 %v1755_v21, %v1755_v21  ;;  %2769 = vmatpush.bf16.msra.mxu0 %v4501_v63  ;;  %v4898_v21 = vld [vmem:[#allocation11 + $0x184] sm:$0xf]  ;;  %v4050_v63 = vld [vmem:[#allocation11 + $0x50] sm:$0xf0] }
 0x185   :  { %v4213_v29 = vor.u32 %v4898_v21, %v4210_v25  ;;  %v4434_v8 = vld [vmem:[#allocation11 + $0x350] sm:$0xf0]  ;;  %v1808_v45 = vmul.f32 %v5420_v52, %v1807_v26 }
 0x186   :  { %v1778_v43 = vrot.slane %v1759_v31, 4  ;;  %2755 = vmatpush.bf16.msra.mxu2 %v4389_v60  ;;  %2731 = vmatpush.bf16.msra.mxu3 %v4101_v6  ;;  %v4862_v60 = vld [vmem:[#allocation11 + $0x64] sm:$0xf]  ;;  %v4053_v6 = vor.u32 %v4858_v62, %v4050_v63  ;;  %v4034_v15 = vld [vmem:[#allocation11 + $0x30] sm:$0xf0] }
 0x187   :  { %2744 = vmatpush.bf16.msra.mxu1 %v4229_v10  ;;  %v4069_v44 = vor.u32 %v4862_v60, %v4066_v40  ;;  %v4181_v10 = vor.u32 %v4890_v1, %v4178_v3  ;;  %v4290_v57 = vld [vmem:[#allocation11 + $0x230] sm:$0xf0]  ;;  %v4037_v28 = vor.u32 %v4854_v13, %v4034_v15  ;;  %v4914_v60 = vld [vmem:[#allocation11 + $0x204] sm:$0xf]  ;;  %v1812_v62 = vsel %vm1811_vm5, %v5420_v52, %v1808_v45 }
 0x188   :  { %v1779_v56 = vadd.f32 %v1778_v43, %v1759_v31  ;;  %v4962_v31 = vld [vmem:[#allocation11 + $0x384] sm:$0xf]  ;;  %2770 = vmatpush.bf16.msra.mxu0 %v4485_v19  ;;  %v4162_v19 = vld [vmem:[#allocation11 + $0x130] sm:$0xf0]  ;;  %v4293_v30 = vor.u32 %v4918_v20, %v4290_v57  ;;  %v1837_v3 = vrot.slane %v1812_v62, 7 }
 0x189   :  { %v4469_v36 = vor.u32 %v4962_v31, %v4466_v9  ;;  %v4850_v31 = vld [vmem:[#allocation11 + $0x4] sm:$0xf]  ;;  %v4018_v9 = vld [vmem:[#allocation11 + $0x10] sm:$0xf0] }
 0x18a   :  { %v1780_v5 = vrot.slane %v1779_v56, 2  ;;  %2756 = vmatpush.bf16.msra.mxu2 %v4373_v59  ;;  %2732 = vmatpush.bf16.msra.mxu3 %v4085_v24  ;;  %v4418_v24 = vld [vmem:[#allocation11 + $0x330] sm:$0xf0]  ;;  %v4021_v46 = vor.u32 %v4850_v31, %v4018_v9  ;;  %v4136_v31 = vld [vmem:[#allocation11 + $0xe8] sm:$0xf] }
 0x18b   :  { %2745 = vmatpush.bf16.msra.mxu1 %v4213_v29  ;;  %v4274_v40 = vld [vmem:[#allocation11 + $0x210] sm:$0xf0] }
 0x18c   :  { %v1781_v16 = vadd.f32 %v1780_v5, %v1779_v56  ;;  %v4958_v56 = vld [vmem:[#allocation11 + $0x364] sm:$0xf]  ;;  %2771 = vmatpush.bf16.msra.mxu0 %v4469_v36  ;;  %v1795_v5 = vmul.f32 %v5428_v27, %v1794_v42 }
 0x18d   :  { %v4453_v61 = vor.u32 %v4958_v56, %v4450_v58 }
 0x18e   :  { %v1782_v23 = vrot.slane %v1781_v16, 1  ;;  %2757 = vmatpush.bf16.msra.mxu2 %v4357_v17  ;;  %2733 = vmatpush.bf16.msra.mxu3 %v4069_v44  ;;  %v4437_v17 = vor.u32 %v4954_v7, %v4434_v8  ;;  %v1796_v25 = vmul.f32 0.5, %v1795_v5  ;;  %v4402_v44 = vld [vmem:[#allocation11 + $0x310] sm:$0xf0]  ;;  %v1788_v5 = vld [vmem:[#allocation8] sm:$0xf] }
 0x18f   :  { %2746 = vmatpush.bf16.msra.mxu1 %v4197_v50  ;;  %v4277_v50 = vor.u32 %v4914_v60, %v4274_v40  ;;  %v4264_v60 = vld [vmem:[#allocation11 + $0x1e8] sm:$0xf]  ;;  %v4913_v40 = vld [vmem:[#allocation11 + $0x1f4] sm:$0xf0] }
 0x190   :  { %v1783_v32 = vadd.f32 %v1782_v23, %v1781_v16  ;;  %v4886_v16 = vld [vmem:[#allocation11 + $0x124] sm:$0xf]  ;;  %2772 = vmatpush.bf16.msra.mxu0 %v4453_v61 }
 0x191   :  { %v4950_v23 = vld [vmem:[#allocation11 + $0x324] sm:$0xf]  ;;  %v4165_v29 = vor.u32 %v4886_v16, %v4162_v19 }
 0x192   :  { %v1787_v43 = vmul.f32 %v1783_v32, %v5381_v38  ;;  %2758 = vmatpush.bf16.msra.mxu2 %v4341_v33  ;;  %v1815_v38 = vmul.f32 %v5426_v22, %v1814_v53  ;;  %2734 = vmatpush.bf16.msra.mxu3 %v4053_v6  ;;  %v4882_v32 = vld [vmem:[#allocation11 + $0x104] sm:$0xf]  ;;  %v4421_v36 = vor.u32 %v4950_v23, %v4418_v24  ;;  %v4146_v53 = vld [vmem:[#allocation11 + $0x110] sm:$0xf0] }
 0x193   :  { %2747 = vmatpush.bf16.msra.mxu1 %v4181_v10  ;;  %v4149_v49 = vor.u32 %v4882_v32, %v4146_v53  ;;  %v4881_v53 = vld [vmem:[#allocation11 + $0xf4] sm:$0xf0] }
 0x194   :  { %v5436_v59 = vadd.f32 1e-05, %v1787_v43  ;;  %v1816_v21 = vmul.f32 0.5, %v1815_v38  ;;  %2773 = vmatpush.bf16.msra.mxu0 %v4437_v17  ;;  %v4946_v43 = vld [vmem:[#allocation11 + $0x304] sm:$0xf]  ;;  %v4137_v45 = vor.u32 %v4881_v53, %v4136_v31 }
 0x195   :  { %v4405_v56 = vor.u32 %v4946_v43, %v4402_v44  ;;  %v4328_v31 = vld [vmem:[#allocation11 + $0x268] sm:$0xf] }
 0x196   :  { %5032 = vrsqrt.f32 %v5436_v59  ;;  %2759 = vmatpush.bf16.msra.mxu2 %v4325_v51  ;;  %v1817_v39 = vsub.f32 1.5, %v1816_v21  ;;  %2735 = vmatpush.bf16.msra.mxu3 %v4037_v28  ;;  %v1797_v51 = vsub.f32 1.5, %v1796_v25  ;;  %vm1829_vm10 = vweird.f32 %v5436_v59  ;;  %v1848_v21 = vld [vmem:[#allocation10] sm:$0xf] }
 0x197   :  { %2748 = vmatpush.bf16.msra.mxu1 %v4165_v29 }
 0x198   :  { %2774 = vmatpush.bf16.msra.mxu0 %v4421_v36  ;;  %v1818_v58 = vmul.f32 %v5426_v22, %v1817_v39  ;;  %v1798_v54 = vmul.f32 %v5428_v27, %v1797_v51  ;;  %v4392_v39 = vld [vmem:[#allocation11 + $0x2e8] sm:$0xf] }
 0x19a   :  { %2760 = vmatpush.bf16.msra.mxu2 %v4309_v11  ;;  %2736 = vmatpush.bf16.msra.mxu3 %v4021_v46  ;;  %v1822_v38 = vsel %vm1821_vm9, %v5426_v22, %v1818_v58  ;;  %v1802_v6 = vsel %vm1801_vm15, %v5428_v27, %v1798_v54  ;;  %v4265_v46 = vor.u32 %v4913_v40, %v4264_v60  ;;  %v4877_v58 = vld [vmem:[#allocation11 + $0xd4] sm:$0xf0]  ;;  %v4056_v60 = vld [vmem:[#allocation11 + $0x48] sm:$0xf] }
 0x19b   :  { %2749 = vmatpush.bf16.msra.mxu1 %v4149_v49  ;;  %v1838_v52 = vrot.slane %v1822_v38, 6  ;;  %v1841_v2 = vsel %vm1840_vm13, %v1802_v6, %v1837_v3  ;;  %v4909_v54 = vld [vmem:[#allocation11 + $0x1d4] sm:$0xf0]  ;;  %v4376_v38 = vld [vmem:[#allocation11 + $0x2c8] sm:$0xf] }
 0x19c   :  { %v5033_v33 = vpop.eup %5032  ;;  %2775 = vmatpush.bf16.msra.mxu0 %v4405_v56  ;;  %v4120_v56 = vld [vmem:[#allocation11 + $0xc8] sm:$0xf]  ;;  %v4873_v6 = vld [vmem:[#allocation11 + $0xb4] sm:$0xf0] }
 0x19d   :  { %v1824_v42 = vmul.f32 %v5033_v33, %v5436_v59  ;;  %vm1830_vm7 = vweird.f32 %v5033_v33  ;;  %v4504_v3 = vld [vmem:[#allocation11 + $0x3c8] sm:$0xf]  ;;  %v4861_v40 = vld [vmem:[#allocation11 + $0x54] sm:$0xf0] }
 0x19e   :  { %2761 = vmatpush.bf16.msra.mxu2 %v4293_v30  ;;  %vm1831_vm11 = vmor %vm1829_vm10, %vm1830_vm7 }
 0x19f   :  { %v1825_v47 = vmul.f32 %v5033_v33, %v1824_v42  ;;  %v4520_v42 = vld [vmem:[#allocation11 + $0x3e8] sm:$0xf] }
 0x1a1   :  { %v1826_v61 = vmul.f32 0.5, %v1825_v47 }
 0x1a2   :  { %2762 = vmatpush.bf16.msra.mxu2 %v4277_v50 }
 0x1a3   :  { %v1827_v63 = vsub.f32 1.5, %v1826_v61 }
 0x1a5   :  { %v1828_v1 = vmul.f32 %v5033_v33, %v1827_v63  ;;  %v4248_v63 = vld [vmem:[#allocation11 + $0x1c8] sm:$0xf] }
 0x1a7   :  { %v1832_v18 = vsel %vm1831_vm11, %v5033_v33, %v1828_v1  ;;  %v4941_v1 = vld [vmem:[#allocation11 + $0x2d4] sm:$0xf0] }
 0x1a8   :  { %v1839_v4 = vrot.slane %v1832_v18, 5  ;;  %v4973_v18 = vld [vmem:[#allocation11 + $0x3d4] sm:$0xf0] }
 0x1aa   :  { %v1843_v22 = vsel %vm1842_vm14, %v1838_v52, %v1839_v4  ;;  %v4121_v52 = vor.u32 %v4877_v58, %v4120_v56  ;;  %v4249_v4 = vor.u32 %v4909_v54, %v4248_v63  ;;  %v4040_v56 = vld [vmem:[#allocation11 + $0x28] sm:$0xf]  ;;  %v4857_v58 = vld [vmem:[#allocation11 + $0x34] sm:$0xf0] }
 0x1ab   :  { %v1845_v59 = vsel %vm1844_vm0, %v1841_v2, %v1843_v22  ;;  %v4377_v2 = vor.u32 %v4941_v1, %v4376_v38  ;;  %v4505_v22 = vor.u32 %v4973_v18, %v4504_v3  ;;  %v4168_v63 = vld [vmem:[#allocation11 + $0x128] sm:$0xf]  ;;  %v4889_v54 = vld [vmem:[#allocation11 + $0x134] sm:$0xf0] }
 0x1ac   :  { %v1847_v7 = vmul.f32 %v1845_v59, %v1788_v5  ;;  %v4104_v5 = vld [vmem:[#allocation11 + $0xa8] sm:$0xf]  ;;  %v4921_v1 = vld [vmem:[#allocation11 + $0x234] sm:$0xf0] }
 0x1ad   :  { %v4232_v59 = vld [vmem:[#allocation11 + $0x1a8] sm:$0xf]  ;;  %v4953_v18 = vld [vmem:[#allocation11 + $0x334] sm:$0xf0] }
 0x1ae   :  { %v1852_v8 = vperm.slane %v1847_v7, 2  ;;  %v1853_v10 = vperm.slane %v1847_v7, 3  ;;  %v1851_v12 = vperm.slane %v1847_v7, 1  ;;  %v1850_v11 = vperm.slane %v1847_v7, 0  ;;  %v4905_v7 = vld [vmem:[#allocation11 + $0x1b4] sm:$0xf0] }
 0x1af   :  { %v4296_v38 = vld [vmem:[#allocation11 + $0x228] sm:$0xf] }
 0x1b0   :  { %v1860_v13 = vmul.f32 %v1852_v8, %v5397_v55  ;;  %v1861_v15 = vmul.f32 %v1853_v10, %v5413_v14  ;;  %v1859_v16 = vmul.f32 %v1851_v12, %v5385_v34  ;;  %v1858_v27 = vmul.f32 %v1850_v11, %v5388_v41  ;;  %v4424_v3 = vld [vmem:[#allocation11 + $0x328] sm:$0xf] }
 0x1b1   :  { %v1877_v26 = vmul.f32 %v1853_v10, %v5401_v0  ;;  %v1874_v55 = vmul.f32 %v1850_v11, %v5367_v35  ;;  %v1875_v14 = vmul.f32 %v1851_v12, %v5372_v48  ;;  %v1876_v34 = vmul.f32 %v1852_v8, %v5379_v37  ;;  %v4945_v0 = vld [vmem:[#allocation11 + $0x2f4] sm:$0xf0]  ;;  %v4360_v8 = vld [vmem:[#allocation11 + $0x2a8] sm:$0xf] }
 0x1b2   :  { %v1867_v17 = vrot.slane %v1860_v13, 6  ;;  %v1868_v19 = vrot.slane %v1861_v15, 5  ;;  %v1866_v20 = vrot.slane %v1859_v16, 7  ;;  %v4977_v37 = vld [vmem:[#allocation11 + $0x3f4] sm:$0xf0]  ;;  %v4393_v61 = vor.u32 %v4945_v0, %v4392_v39 }
 0x1b3   :  { %v4521_v62 = vor.u32 %v4977_v37, %v4520_v42  ;;  %v4937_v10 = vld [vmem:[#allocation11 + $0x2b4] sm:$0xf0]  ;;  %v4488_v12 = vld [vmem:[#allocation11 + $0x3a8] sm:$0xf]  ;;  %v4105_v13 = vor.u32 %v4873_v6, %v4104_v5  ;;  %v4233_v15 = vor.u32 %v4905_v7, %v4232_v59  ;;  %v4169_v5 = vor.u32 %v4889_v54, %v4168_v63  ;;  %v4899_v63 = vld [vmem:[#allocation11 + $0x18c] sm:$0xf] }
 0x1b4   :  { %v1870_v57 = vsel %vm1842_vm14, %v1867_v17, %v1868_v19  ;;  %v1869_v23 = vsel %vm1840_vm13, %v1858_v27, %v1866_v20  ;;  %v4969_v11 = vld [vmem:[#allocation11 + $0x3b4] sm:$0xf0]  ;;  %v4088_v16 = vld [vmem:[#allocation11 + $0x88] sm:$0xf]  ;;  %v4361_v19 = vor.u32 %v4937_v10, %v4360_v8  ;;  %v4297_v59 = vor.u32 %v4921_v1, %v4296_v38  ;;  %v4218_v54 = vld [vmem:[#allocation11 + $0x198] sm:$0xf0] }
 0x1b5   :  { %v1871_v24 = vsel %vm1844_vm0, %v1869_v23, %v1870_v57  ;;  %v4869_v17 = vld [vmem:[#allocation11 + $0x94] sm:$0xf0]  ;;  %v4489_v27 = vor.u32 %v4969_v11, %v4488_v12  ;;  %v4216_v20 = vld [vmem:[#allocation11 + $0x188] sm:$0xf]  ;;  %v4425_v7 = vor.u32 %v4953_v18, %v4424_v3  ;;  %v4931_v38 = vld [vmem:[#allocation11 + $0x28c] sm:$0xf] }
 0x1b6   :  { %v1873_v25 = vsub.f32 %v1848_v21, %v1871_v24  ;;  %v4901_v57 = vld [vmem:[#allocation11 + $0x194] sm:$0xf0]  ;;  %v4344_v21 = vld [vmem:[#allocation11 + $0x288] sm:$0xf]  ;;  %v4346_v1 = vld [vmem:[#allocation11 + $0x298] sm:$0xf0] }
 0x1b7   :  { %v4933_v23 = vld [vmem:[#allocation11 + $0x294] sm:$0xf0]  ;;  %v4472_v24 = vld [vmem:[#allocation11 + $0x388] sm:$0xf]  ;;  %v4963_v3 = vld [vmem:[#allocation11 + $0x38c] sm:$0xf] }
 0x1b8   :  { %v1879_v28 = vperm.slane %v1873_v25, 0  ;;  %v1880_v29 = vperm.slane %v1873_v25, 1  ;;  %v1881_v41 = vperm.slane %v1873_v25, 2  ;;  %v1882_v30 = vperm.slane %v1873_v25, 3  ;;  %v4965_v25 = vld [vmem:[#allocation11 + $0x394] sm:$0xf0] }
 0x1b9   :  { %v4184_v42 = vld [vmem:[#allocation11 + $0x148] sm:$0xf]  ;;  %v4957_v37 = vld [vmem:[#allocation11 + $0x354] sm:$0xf0]  ;;  %v4474_v18 = vld [vmem:[#allocation11 + $0x398] sm:$0xf0] }
 0x1ba   :  { %v1887_v9 = vadd.f32 %v1879_v28, %v1874_v55  ;;  %v1888_v32 = vadd.f32 %v1880_v29, %v1875_v14  ;;  %v1889_v33 = vadd.f32 %v1881_v41, %v1876_v34  ;;  %v1890_v36 = vadd.f32 %v1882_v30, %v1877_v26  ;;  %v4072_v14 = vld [vmem:[#allocation11 + $0x68] sm:$0xf]  ;;  %v4865_v34 = vld [vmem:[#allocation11 + $0x74] sm:$0xf0] }
 0x1bb   :  { %v4089_v26 = vor.u32 %v4869_v17, %v4088_v16  ;;  %v4217_v55 = vor.u32 %v4901_v57, %v4216_v20  ;;  %v4345_v28 = vor.u32 %v4933_v23, %v4344_v21  ;;  %v4473_v29 = vor.u32 %v4965_v25, %v4472_v24  ;;  %v4200_v41 = vld [vmem:[#allocation11 + $0x168] sm:$0xf]  ;;  %v4897_v30 = vld [vmem:[#allocation11 + $0x174] sm:$0xf0]  ;;  %v4911_v16 = vld [vmem:[#allocation11 + $0x1ec] sm:$0xf] }
 0x1bc   :  { %v1891_v35 = vmax.f32 %v1887_v9, 0.0  ;;  %v1892_v43 = vmax.f32 %v1888_v32, 0.0  ;;  %v1893_v48 = vmax.f32 %v1889_v33, 0.0  ;;  %v1894_v44 = vmax.f32 %v1890_v36, 0.0  ;;  %v4929_v9 = vld [vmem:[#allocation11 + $0x274] sm:$0xf0] }
 0x1bd   :  { %v4456_v32 = vld [vmem:[#allocation11 + $0x368] sm:$0xf]  ;;  %v4961_v33 = vld [vmem:[#allocation11 + $0x374] sm:$0xf0]  ;;  %v4073_v36 = vor.u32 %v4865_v34, %v4072_v14  ;;  %v4201_v53 = vor.u32 %v4897_v30, %v4200_v41  ;;  %v4329_v39 = vor.u32 %v4929_v9, %v4328_v31  ;;  %v4266_v17 = vld [vmem:[#allocation11 + $0x1f8] sm:$0xf0] }
 0x1be   :  { %v5469_v47 = vpack.c.bf16 %v1891_v35, %v1891_v35  ;;  %v5471_v49 = vpack.c.bf16 %v1892_v43, %v1892_v43  ;;  %v5473_v50 = vpack.c.bf16 %v1893_v48, %v1893_v48  ;;  %v5475_v51 = vpack.c.bf16 %v1894_v44, %v1894_v44  ;;  %v4893_v35 = vld [vmem:[#allocation11 + $0x154] sm:$0xf0]  ;;  %v4312_v43 = vld [vmem:[#allocation11 + $0x248] sm:$0xf]  ;;  %v4394_v57 = vld [vmem:[#allocation11 + $0x2f8] sm:$0xf0] }
 0x1bf   :  { %v4457_v0 = vor.u32 %v4961_v33, %v4456_v32  ;;  %v4925_v48 = vld [vmem:[#allocation11 + $0x254] sm:$0xf0]  ;;  %v4440_v44 = vld [vmem:[#allocation11 + $0x348] sm:$0xf]  ;;  %v4975_v21 = vld [vmem:[#allocation11 + $0x3ec] sm:$0xf] }
 0x1c0   :  { %2685 = vmatmul.bf16.vlgmr.msrb.gmra.mxu3 %v5469_v47  ;;  %2698 = vmatmul.bf16.vlgmr.msrb.gmra.mxu1 %v5471_v49  ;;  %v4853_v6 = vld [vmem:[#allocation11 + $0x14] sm:$0xf0]  ;;  %v4280_v8 = vld [vmem:[#allocation11 + $0x208] sm:$0xf]  ;;  %v4522_v23 = vld [vmem:[#allocation11 + $0x3f8] sm:$0xf0] }
 0x1c1   :  { %2711 = vmatmul.bf16.vlgmr.msrb.gmra.mxu2 %v5473_v50  ;;  %2724 = vmatmul.bf16.vlgmr.msrb.gmra.mxu0 %v5475_v51  ;;  %v4917_v10 = vld [vmem:[#allocation11 + $0x214] sm:$0xf0]  ;;  %v4408_v12 = vld [vmem:[#allocation11 + $0x308] sm:$0xf]  ;;  %v4875_v14 = vld [vmem:[#allocation11 + $0xcc] sm:$0xf] }
 0x1c2   :  { %2781 = vmatpush.bf16.msrb.mxu3 %v4137_v45  ;;  %2794 = vmatpush.bf16.msrb.mxu1 %v4265_v46  ;;  %v4057_v45 = vor.u32 %v4861_v40, %v4056_v60  ;;  %v4185_v46 = vor.u32 %v4893_v35, %v4184_v42  ;;  %v4949_v11 = vld [vmem:[#allocation11 + $0x314] sm:$0xf0]  ;;  %v4281_v24 = vor.u32 %v4917_v10, %v4280_v8  ;;  %v4122_v34 = vld [vmem:[#allocation11 + $0xd8] sm:$0xf0]  ;;  %v4907_v41 = vld [vmem:[#allocation11 + $0x1cc] sm:$0xf] }
 0x1c3   :  { %2807 = vmatpush.bf16.msrb.mxu2 %v4393_v61  ;;  %2820 = vmatpush.bf16.msrb.mxu0 %v4521_v62  ;;  %v4313_v61 = vor.u32 %v4925_v48, %v4312_v43  ;;  %v4441_v62 = vor.u32 %v4957_v37, %v4440_v44  ;;  %v4409_v25 = vor.u32 %v4949_v11, %v4408_v12  ;;  %v4250_v30 = vld [vmem:[#allocation11 + $0x1d8] sm:$0xf0]  ;;  %v4939_v31 = vld [vmem:[#allocation11 + $0x2cc] sm:$0xf] }
 0x1c4   :  { %v4378_v9 = vld [vmem:[#allocation11 + $0x2d8] sm:$0xf0]  ;;  %v4971_v32 = vld [vmem:[#allocation11 + $0x3cc] sm:$0xf] }
 0x1c5   :  { %v4506_v33 = vld [vmem:[#allocation11 + $0x3d8] sm:$0xf0]  ;;  %v4871_v60 = vld [vmem:[#allocation11 + $0xac] sm:$0xf] }
 0x1c6   :  { %2782 = vmatpush.bf16.msrb.mxu3 %v4121_v52  ;;  %2795 = vmatpush.bf16.msrb.mxu1 %v4249_v4  ;;  %v4024_v52 = vld [vmem:[#allocation11 + $0x8] sm:$0xf]  ;;  %v4041_v4 = vor.u32 %v4857_v58, %v4040_v56  ;;  %v4106_v40 = vld [vmem:[#allocation11 + $0xb8] sm:$0xf0]  ;;  %v4903_v42 = vld [vmem:[#allocation11 + $0x1ac] sm:$0xf] }
 0x1c7   :  { %2808 = vmatpush.bf16.msrb.mxu2 %v4377_v2  ;;  %2821 = vmatpush.bf16.msrb.mxu0 %v4505_v22  ;;  %v4152_v2 = vld [vmem:[#allocation11 + $0x108] sm:$0xf]  ;;  %v4885_v22 = vld [vmem:[#allocation11 + $0x114] sm:$0xf0]  ;;  %v4234_v35 = vld [vmem:[#allocation11 + $0x1b8] sm:$0xf0] }
 0x1c8   :  { %v4153_v20 = vor.u32 %v4885_v22, %v4152_v2  ;;  %v4935_v43 = vld [vmem:[#allocation11 + $0x2ac] sm:$0xf]  ;;  %v4362_v48 = vld [vmem:[#allocation11 + $0x2b8] sm:$0xf0]  ;;  %v4349_v2 = vor.u32 %v4931_v38, %v4346_v1  ;;  %v4477_v22 = vor.u32 %v4963_v3, %v4474_v18  ;;  %v4980_v3 = vld [vmem:[#allocation13 + $0x10] sm:$0xff] }
 0x1c9   :  { %v4967_v44 = vld [vmem:[#allocation11 + $0x3ac] sm:$0xf]  ;;  %v4490_v37 = vld [vmem:[#allocation11 + $0x3b8] sm:$0xf0]  ;;  %v4992_v18 = vld [vmem:[#allocation13 + $0x70] sm:$0xff] }
 0x1ca   :  { %2783 = vmatpush.bf16.msrb.mxu3 %v4105_v13  ;;  %2796 = vmatpush.bf16.msrb.mxu1 %v4233_v15  ;;  %v4879_v13 = vld [vmem:[#allocation11 + $0xec] sm:$0xf]  ;;  %v4138_v15 = vld [vmem:[#allocation11 + $0xf8] sm:$0xf0] }
 0x1cb   :  { %2809 = vmatpush.bf16.msrb.mxu2 %v4361_v19  ;;  %2822 = vmatpush.bf16.msrb.mxu0 %v4489_v27  ;;  %v4943_v19 = vld [vmem:[#allocation11 + $0x2ec] sm:$0xf]  ;;  %v4025_v27 = vor.u32 %v4853_v6, %v4024_v52  ;;  %v4090_v58 = vld [vmem:[#allocation11 + $0x98] sm:$0xf0] }
 0x1cc   :  { %v4867_v56 = vld [vmem:[#allocation11 + $0x8c] sm:$0xf]  ;;  %v4074_v6 = vld [vmem:[#allocation11 + $0x78] sm:$0xf0] }
 0x1cd   :  { %v4093_v52 = vor.u32 %v4867_v56, %v4090_v58  ;;  %v4927_v8 = vld [vmem:[#allocation11 + $0x26c] sm:$0xf]  ;;  %v4330_v10 = vld [vmem:[#allocation11 + $0x278] sm:$0xf0] }
 0x1ce   :  { %2784 = vmatpush.bf16.msrb.mxu3 %v4089_v26  ;;  %2797 = vmatpush.bf16.msrb.mxu1 %v4217_v55  ;;  %v4141_v26 = vor.u32 %v4879_v13, %v4138_v15  ;;  %v4269_v55 = vor.u32 %v4911_v16, %v4266_v17  ;;  %v4959_v12 = vld [vmem:[#allocation11 + $0x36c] sm:$0xf]  ;;  %v4458_v11 = vld [vmem:[#allocation11 + $0x378] sm:$0xf0] }
 0x1cf   :  { %2810 = vmatpush.bf16.msrb.mxu2 %v4345_v28  ;;  %2823 = vmatpush.bf16.msrb.mxu0 %v4473_v29  ;;  %v4397_v28 = vor.u32 %v4943_v19, %v4394_v57  ;;  %v4525_v29 = vor.u32 %v4975_v21, %v4522_v23  ;;  %v4859_v16 = vld [vmem:[#allocation11 + $0x4c] sm:$0xf]  ;;  %v4058_v17 = vld [vmem:[#allocation11 + $0x58] sm:$0xf0]  ;;  %v4333_v19 = vor.u32 %v4927_v8, %v4330_v10  ;;  %v4986_v10 = vld [vmem:[#allocation13 + $0x40] sm:$0xff] }
 0x1d0   :  { %2737 = vmatmul.bf16.vlgmr.msra.gmra.mxu3 %v5469_v47  ;;  %2750 = vmatmul.bf16.vlgmr.msra.gmra.mxu1 %v5471_v49  ;;  %v4186_v57 = vld [vmem:[#allocation11 + $0x158] sm:$0xf0]  ;;  %v4923_v21 = vld [vmem:[#allocation11 + $0x24c] sm:$0xf] }
 0x1d1   :  { %2763 = vmatmul.bf16.vlgmr.msra.gmra.mxu2 %v5473_v50  ;;  %2776 = vmatmul.bf16.vlgmr.msra.gmra.mxu0 %v5475_v51  ;;  %v4314_v23 = vld [vmem:[#allocation11 + $0x258] sm:$0xf0] }
 0x1d2   :  { %2785 = vmatpush.bf16.msrb.mxu3 %v4073_v36  ;;  %2798 = vmatpush.bf16.msrb.mxu1 %v4201_v53  ;;  %v4125_v36 = vor.u32 %v4875_v14, %v4122_v34  ;;  %v4253_v53 = vor.u32 %v4907_v41, %v4250_v30  ;;  %v4855_v14 = vld [vmem:[#allocation11 + $0x2c] sm:$0xf]  ;;  %v4042_v34 = vld [vmem:[#allocation11 + $0x38] sm:$0xf0] }
 0x1d3   :  { %2811 = vmatpush.bf16.msrb.mxu2 %v4329_v39  ;;  %2824 = vmatpush.bf16.msrb.mxu0 %v4457_v0  ;;  %v4381_v39 = vor.u32 %v4939_v31, %v4378_v9  ;;  %v4509_v0 = vor.u32 %v4971_v32, %v4506_v33  ;;  %v4887_v41 = vld [vmem:[#allocation11 + $0x12c] sm:$0xf]  ;;  %v4170_v30 = vld [vmem:[#allocation11 + $0x138] sm:$0xf0] }
 0x1d4   :  { %v4919_v31 = vld [vmem:[#allocation11 + $0x22c] sm:$0xf]  ;;  %v4298_v9 = vld [vmem:[#allocation11 + $0x238] sm:$0xf0] }
 0x1d5   :  { %v4951_v32 = vld [vmem:[#allocation11 + $0x32c] sm:$0xf]  ;;  %v4426_v33 = vld [vmem:[#allocation11 + $0x338] sm:$0xf0] }
 0x1d6   :  { %2786 = vmatpush.bf16.msrb.mxu3 %v4057_v45  ;;  %2799 = vmatpush.bf16.msrb.mxu1 %v4185_v46  ;;  %v4109_v45 = vor.u32 %v4871_v60, %v4106_v40  ;;  %v4237_v46 = vor.u32 %v4903_v42, %v4234_v35  ;;  %v4851_v60 = vld [vmem:[#allocation11 + $0xc] sm:$0xf]  ;;  %v4026_v40 = vld [vmem:[#allocation11 + $0x18] sm:$0xf0] }
 0x1d7   :  { %2812 = vmatpush.bf16.msrb.mxu2 %v4313_v61  ;;  %2825 = vmatpush.bf16.msrb.mxu0 %v4441_v62  ;;  %v4365_v61 = vor.u32 %v4935_v43, %v4362_v48  ;;  %v4493_v62 = vor.u32 %v4967_v44, %v4490_v37  ;;  %v4883_v42 = vld [vmem:[#allocation11 + $0x10c] sm:$0xf]  ;;  %v4154_v35 = vld [vmem:[#allocation11 + $0x118] sm:$0xf0] }
 0x1d8   :  { %v4915_v43 = vld [vmem:[#allocation11 + $0x20c] sm:$0xf]  ;;  %v4282_v48 = vld [vmem:[#allocation11 + $0x218] sm:$0xf0] }
 0x1d9   :  { %v4947_v44 = vld [vmem:[#allocation11 + $0x30c] sm:$0xf]  ;;  %v4410_v37 = vld [vmem:[#allocation11 + $0x318] sm:$0xf0]  ;;  %v4285_v56 = vor.u32 %v4915_v43, %v4282_v48 }
 0x1da   :  { %2787 = vmatpush.bf16.msrb.mxu3 %v4041_v4  ;;  %2800 = vmatpush.bf16.msrb.mxu1 %v4169_v5  ;;  %v4221_v4 = vor.u32 %v4899_v63, %v4218_v54  ;;  %v4863_v5 = vld [vmem:[#allocation11 + $0x6c] sm:$0xf]  ;;  %v4413_v58 = vor.u32 %v4947_v44, %v4410_v37  ;;  %v4982_v54 = vld [vmem:[#allocation13 + $0x20] sm:$0xff]  ;;  %v4993_v38 = vld [vmem:[#allocation13 + $0x78] sm:$0xff] }
 0x1db   :  { %2813 = vmatpush.bf16.msrb.mxu2 %v4297_v59  ;;  %2826 = vmatpush.bf16.msrb.mxu0 %v4425_v7  ;;  %v4895_v59 = vld [vmem:[#allocation11 + $0x16c] sm:$0xf]  ;;  %v4202_v7 = vld [vmem:[#allocation11 + $0x178] sm:$0xf0]  ;;  %v4077_v13 = vor.u32 %v4863_v5, %v4074_v6  ;;  %v4988_v5 = vld [vmem:[#allocation13 + $0x50] sm:$0xff] }
 0x1dc   :  { %v4205_v15 = vor.u32 %v4895_v59, %v4202_v7  ;;  %v4983_v63 = vld [vmem:[#allocation13 + $0x28] sm:$0xff]  ;;  %v4981_v1 = vld [vmem:[#allocation13 + $0x18] sm:$0xff]  ;;  %v5000_v6 = vld [vmem:[#allocation13 + $0xb0] sm:$0xff] }
 0x1dd   :  { %v5496_v7 = vld [vmem:[%s5514_s6] sm:$0xf] }
 0x1de   :  { %2788 = vmatpush.bf16.msrb.mxu3 %v4025_v27  ;;  %2801 = vmatpush.bf16.msrb.mxu1 %v4153_v20  ;;  %v4461_v27 = vor.u32 %v4959_v12, %v4458_v11  ;;  %v4891_v20 = vld [vmem:[#allocation11 + $0x14c] sm:$0xf]  ;;  %v4998_v12 = vld [vmem:[#allocation13 + $0xa0] sm:$0xff]  ;;  %v2029_v11 = vperm.slane %v5496_v7, 0  ;;  %v5005_v44 = vld [vmem:[#allocation13 + $0xd8] sm:$0xff] }
 0x1df   :  { %2814 = vmatpush.bf16.msrb.mxu2 %v4281_v24  ;;  %2827 = vmatpush.bf16.msrb.mxu0 %v4409_v25  ;;  %v4955_v24 = vld [vmem:[#allocation11 + $0x34c] sm:$0xf]  ;;  %v4442_v25 = vld [vmem:[#allocation11 + $0x358] sm:$0xf0] }
 0x1e1   :  { %2789 = vmatmul.bf16.vlgmr.msrb.gmra.mxu3 %v5469_v47  ;;  %2802 = vmatmul.bf16.vlgmr.msrb.gmra.mxu1 %v5471_v49 }
 0x1e2   :  { %2833 = vmatpush.bf16.msra.mxu3 %v4141_v26  ;;  %2846 = vmatpush.bf16.msra.mxu1 %v4269_v55  ;;  %v4061_v26 = vor.u32 %v4859_v16, %v4058_v17  ;;  %v4189_v55 = vor.u32 %v4891_v20, %v4186_v57  ;;  %v4996_v57 = vld [vmem:[#allocation13 + $0x90] sm:$0xff] }
 0x1e3   :  { %2859 = vmatpush.bf16.msra.mxu2 %v4397_v28  ;;  %2872 = vmatpush.bf16.msra.mxu0 %v4525_v29  ;;  %v4317_v28 = vor.u32 %v4923_v21, %v4314_v23  ;;  %v4445_v29 = vor.u32 %v4955_v24, %v4442_v25  ;;  %v4995_v25 = vld [vmem:[#allocation13 + $0x88] sm:$0xff] }
 0x1e4   :  { %2815 = vmatmul.bf16.vlgmr.msrb.gmra.mxu2 %v5473_v50  ;;  %2828 = vmatmul.bf16.vlgmr.msrb.gmra.mxu0 %v5475_v51 }
 0x1e6   :  { %2834 = vmatpush.bf16.msra.mxu3 %v4125_v36  ;;  %2847 = vmatpush.bf16.msra.mxu1 %v4253_v53  ;;  %v4045_v36 = vor.u32 %v4855_v14, %v4042_v34  ;;  %v4173_v53 = vor.u32 %v4887_v41, %v4170_v30  ;;  %v5009_v41 = vld [vmem:[#allocation13 + $0xf8] sm:$0xff]  ;;  %v2030_v30 = vperm.slane %v5496_v7, 1 }
 0x1e7   :  { %2860 = vmatpush.bf16.msra.mxu2 %v4381_v39  ;;  %2873 = vmatpush.bf16.msra.mxu0 %v4509_v0  ;;  %v4301_v39 = vor.u32 %v4919_v31, %v4298_v9  ;;  %v4429_v0 = vor.u32 %v4951_v32, %v4426_v33  ;;  %v5008_v31 = vld [vmem:[#allocation13 + $0xf0] sm:$0xff] }
 0x1ea   :  { %2835 = vmatpush.bf16.msra.mxu3 %v4109_v45  ;;  %2848 = vmatpush.bf16.msra.mxu1 %v4237_v46  ;;  %v4029_v45 = vor.u32 %v4851_v60, %v4026_v40  ;;  %v4157_v46 = vor.u32 %v4883_v42, %v4154_v35  ;;  %v5006_v35 = vld [vmem:[#allocation13 + $0xe0] sm:$0xff] }
 0x1eb   :  { %2861 = vmatpush.bf16.msra.mxu2 %v4365_v61  ;;  %2874 = vmatpush.bf16.msra.mxu0 %v4493_v62  ;;  %v4985_v61 = vld [vmem:[#allocation13 + $0x38] sm:$0xff]  ;;  %v4984_v62 = vld [vmem:[#allocation13 + $0x30] sm:$0xff] }
 0x1ee   :  { %2836 = vmatpush.bf16.msra.mxu3 %v4093_v52  ;;  %2849 = vmatpush.bf16.msra.mxu1 %v4221_v4  ;;  %v4991_v52 = vld [vmem:[#allocation13 + $0x68] sm:$0xff]  ;;  %v4989_v4 = vld [vmem:[#allocation13 + $0x58] sm:$0xff] }
 0x1ef   :  { %2862 = vmatpush.bf16.msra.mxu2 %v4349_v2  ;;  %2875 = vmatpush.bf16.msra.mxu0 %v4477_v22  ;;  %v4987_v2 = vld [vmem:[#allocation13 + $0x48] sm:$0xff] }
 0x1f0   :  { %v4999_v22 = vld [vmem:[#allocation13 + $0xa8] sm:$0xff] }
 0x1f2   :  { %2837 = vmatpush.bf16.msra.mxu3 %v4077_v13  ;;  %2850 = vmatpush.bf16.msra.mxu1 %v4205_v15  ;;  %v4997_v13 = vld [vmem:[#allocation13 + $0x98] sm:$0xff] }
 0x1f3   :  { %2863 = vmatpush.bf16.msra.mxu2 %v4333_v19  ;;  %2876 = vmatpush.bf16.msra.mxu0 %v4461_v27 }
 0x1f6   :  { %2838 = vmatpush.bf16.msra.mxu3 %v4061_v26  ;;  %2851 = vmatpush.bf16.msra.mxu1 %v4189_v55 }
 0x1f7   :  { %2864 = vmatpush.bf16.msra.mxu2 %v4317_v28  ;;  %2877 = vmatpush.bf16.msra.mxu0 %v4445_v29  ;;  %v4994_v29 = vld [vmem:[#allocation13 + $0x80] sm:$0xff] }
 0x1fa   :  { %2839 = vmatpush.bf16.msra.mxu3 %v4045_v36  ;;  %2852 = vmatpush.bf16.msra.mxu1 %v4173_v53  ;;  %v5007_v53 = vld [vmem:[#allocation13 + $0xe8] sm:$0xff] }
 0x1fb   :  { %2865 = vmatpush.bf16.msra.mxu2 %v4301_v39  ;;  %2878 = vmatpush.bf16.msra.mxu0 %v4429_v0 }
 0x1fe   :  { %2840 = vmatpush.bf16.msra.mxu3 %v4029_v45  ;;  %2853 = vmatpush.bf16.msra.mxu1 %v4157_v46 }
 0x1ff   :  { %2866 = vmatpush.bf16.msra.mxu2 %v4285_v56  ;;  %2879 = vmatpush.bf16.msra.mxu0 %v4413_v58  ;;  %v2031_v56 = vperm.slane %v5496_v7, 2  ;;  %v5004_v58 = vld [vmem:[#allocation13 + $0xd0] sm:$0xff] }
 0x201   :  { %2841 = vmatmul.bf16.vlgmr.msra.gmra.mxu3 %v5469_v47  ;;  %2854 = vmatmul.bf16.vlgmr.msra.gmra.mxu1 %v5471_v49  ;;  %v4979_v47 = vld [vmem:[#allocation13 + $0x8] sm:$0xff]  ;;  %v4978_v49 = vld [vmem:[#allocation13] sm:$0xff] }
 0x202   :  { %3153 = vmatpush.bf16.msrb.mxu3 %v4985_v61  ;;  %2867 = vmatmul.bf16.vlgmr.msra.gmra.mxu2 %v5473_v50  ;;  %v4990_v50 = vld [vmem:[#allocation13 + $0x60] sm:$0xff] }
 0x203   :  { %2880 = vmatmul.bf16.vlgmr.msra.gmra.mxu0 %v5475_v51  ;;  %3166 = vmatpush.bf16.msrb.mxu1 %v4993_v38  ;;  %v5001_v51 = vld [vmem:[#allocation13 + $0xb8] sm:$0xff]  ;;  %v5003_v38 = vld [vmem:[#allocation13 + $0xc8] sm:$0xff] }
 0x204   :  { %3179 = vmatpush.bf16.msrb.mxu2 %v5001_v51  ;;  %3192 = vmatpush.bf16.msrb.mxu0 %v5009_v41 }
 0x206   :  { %3154 = vmatpush.bf16.msrb.mxu3 %v4984_v62 }
 0x207   :  { %3167 = vmatpush.bf16.msrb.mxu1 %v4992_v18 }
 0x208   :  { %3180 = vmatpush.bf16.msrb.mxu2 %v5000_v6  ;;  %3193 = vmatpush.bf16.msrb.mxu0 %v5008_v31 }
 0x20a   :  { %3155 = vmatpush.bf16.msrb.mxu3 %v4983_v63 }
 0x20b   :  { %3168 = vmatpush.bf16.msrb.mxu1 %v4991_v52 }
 0x20c   :  { %3181 = vmatpush.bf16.msrb.mxu2 %v4999_v22  ;;  %3194 = vmatpush.bf16.msrb.mxu0 %v5007_v53 }
 0x20e   :  { %3156 = vmatpush.bf16.msrb.mxu3 %v4982_v54 }
 0x20f   :  { %3169 = vmatpush.bf16.msrb.mxu1 %v4990_v50 }
 0x210   :  { %3182 = vmatpush.bf16.msrb.mxu2 %v4998_v12  ;;  %3195 = vmatpush.bf16.msrb.mxu0 %v5006_v35 }
 0x212   :  { %3157 = vmatpush.bf16.msrb.mxu3 %v4981_v1 }
 0x213   :  { %3170 = vmatpush.bf16.msrb.mxu1 %v4989_v4 }
 0x214   :  { %3183 = vmatpush.bf16.msrb.mxu2 %v4997_v13  ;;  %3196 = vmatpush.bf16.msrb.mxu0 %v5005_v44 }
 0x216   :  { %3158 = vmatpush.bf16.msrb.mxu3 %v4980_v3 }
 0x217   :  { %3171 = vmatpush.bf16.msrb.mxu1 %v4988_v5 }
 0x218   :  { %3184 = vmatpush.bf16.msrb.mxu2 %v4996_v57  ;;  %3197 = vmatpush.bf16.msrb.mxu0 %v5004_v58 }
 0x21a   :  { %3159 = vmatpush.bf16.msrb.mxu3 %v4979_v47  ;;  %v5002_v47 = vld [vmem:[#allocation13 + $0xc0] sm:$0xff] }
 0x21b   :  { %3172 = vmatpush.bf16.msrb.mxu1 %v4987_v2  ;;  %v2032_v2 = vperm.slane %v5496_v7, 3  ;;  %v5023_v7 = vld [vmem:[%s5516_s8] ss:$0 sm:$0xff] }
 0x21c   :  { %3185 = vmatpush.bf16.msrb.mxu2 %v4995_v25  ;;  %3198 = vmatpush.bf16.msrb.mxu0 %v5003_v38 }
 0x21e   :  { %3160 = vmatpush.bf16.msrb.mxu3 %v4978_v49 }
 0x21f   :  { %3173 = vmatpush.bf16.msrb.mxu1 %v4986_v10 }
 0x220   :  { %3186 = vmatpush.bf16.msrb.mxu2 %v4994_v29  ;;  %3199 = vmatpush.bf16.msrb.mxu0 %v5002_v47 }
 0x23d   :  { %v2699_v59 = vpop.f32.mrf.mxu1 }
 0x23e   :  { %v2725_v8 = vpop.f32.mrf.mxu0 }
 0x243   :  { %v2686_v15 = vpop.f32.mrf.mxu3 }
 0x244   :  { %v2687_v16 = vadd.f32 %v2686_v15, %v2029_v11  ;;  %v2712_v17 = vpop.f32.mrf.mxu2 }
 0x245   :  { %v2701_v19 = vpop.f32.mrf.mxu1 }
 0x246   :  { %v2700_v27 = vadd.f32 %v2699_v59, %v2687_v16  ;;  %v2727_v20 = vpop.f32.mrf.mxu0 }
 0x248   :  { %v2713_v21 = vadd.f32 %v2712_v17, %v2700_v27 }
 0x24a   :  { %v2726_v23 = vadd.f32 %v2725_v8, %v2713_v21 }
 0x24b   :  { %v2688_v24 = vpop.f32.mrf.mxu3 }
 0x24c   :  { %v2885_v26 = vmax.f32 %v2726_v23, 0.0  ;;  %v2714_v55 = vpop.f32.mrf.mxu2 }
 0x24d   :  { %v2751_v14 = vpop.f32.mrf.mxu1 }
 0x24e   :  { %v2889_v34 = vpack.c.bf16 %v2885_v26, %v2885_v26  ;;  %v2777_v28 = vpop.f32.mrf.mxu0 }
 0x250   :  { %3161 = vmatmul.bf16.vlgmr.msrb.gmra.mxu3 %v2889_v34 }
 0x253   :  { %v2738_v9 = vpop.f32.mrf.mxu3 }
 0x254   :  { %v2739_v32 = vadd.f32 %v2738_v9, %v2030_v30  ;;  %v2764_v33 = vpop.f32.mrf.mxu2 }
 0x255   :  { %v2753_v36 = vpop.f32.mrf.mxu1 }
 0x256   :  { %v2752_v60 = vadd.f32 %v2751_v14, %v2739_v32  ;;  %v2779_v40 = vpop.f32.mrf.mxu0 }
 0x258   :  { %v2765_v39 = vadd.f32 %v2764_v33, %v2752_v60 }
 0x25a   :  { %v2778_v0 = vadd.f32 %v2777_v28, %v2765_v39 }
 0x25b   :  { %v2740_v42 = vpop.f32.mrf.mxu3 }
 0x25c   :  { %v2886_v43 = vmax.f32 %v2778_v0, 0.0  ;;  %v2766_v48 = vpop.f32.mrf.mxu2 }
 0x25e   :  { %v2890_v37 = vpack.c.bf16 %v2886_v43, %v2886_v43  ;;  %v2803_v45 = vpop.f32.mrf.mxu1 }
 0x260   :  { %3174 = vmatmul.bf16.vlgmr.msrb.gmra.mxu1 %v2890_v37 }
 0x261   :  { %v2829_v46 = vpop.f32.mrf.mxu0 }
 0x264   :  { %v2790_v61 = vpop.f32.mrf.mxu3 }
 0x265   :  { %v2791_v62 = vadd.f32 %v2790_v61, %v2031_v56 }
 0x266   :  { %v2805_v54 = vpop.f32.mrf.mxu1 }
 0x267   :  { %v2816_v63 = vpop.f32.mrf.mxu2  ;;  %v2804_v1 = vadd.f32 %v2803_v45, %v2791_v62 }
 0x269   :  { %v2831_v3 = vpop.f32.mrf.mxu0  ;;  %v2817_v18 = vadd.f32 %v2816_v63, %v2804_v1 }
 0x26b   :  { %v2830_v52 = vadd.f32 %v2829_v46, %v2817_v18 }
 0x26c   :  { %v2792_v49 = vpop.f32.mrf.mxu3 }
 0x26d   :  { %v2887_v50 = vmax.f32 %v2830_v52, 0.0 }
 0x26f   :  { %v2818_v51 = vpop.f32.mrf.mxu2  ;;  %v2891_v4 = vpack.c.bf16 %v2887_v50, %v2887_v50 }
 0x271   :  { %3187 = vmatmul.bf16.vlgmr.msrb.gmra.mxu2 %v2891_v4 }
 0x27e   :  { %v2855_v5 = vpop.f32.mrf.mxu1 }
 0x280   :  { %v2881_v6 = vpop.f32.mrf.mxu0 }
 0x284   :  { %v2842_v22 = vpop.f32.mrf.mxu3 }
 0x285   :  { %v2843_v59 = vadd.f32 %v2842_v22, %v2032_v2  ;;  %v2868_v8 = vpop.f32.mrf.mxu2 }
 0x286   :  { %v2857_v10 = vpop.f32.mrf.mxu1 }
 0x287   :  { %v2856_v12 = vadd.f32 %v2855_v5, %v2843_v59 }
 0x288   :  { %v2883_v11 = vpop.f32.mrf.mxu0 }
 0x289   :  { %v2869_v13 = vadd.f32 %v2868_v8, %v2856_v12 }
 0x28b   :  { %v2882_v15 = vadd.f32 %v2881_v6, %v2869_v13 }
 0x28c   :  { %v2844_v16 = vpop.f32.mrf.mxu3 }
 0x28d   :  { %v2888_v17 = vmax.f32 %v2882_v15, 0.0  ;;  %v2870_v19 = vpop.f32.mrf.mxu2 }
 0x28f   :  { %v2892_v27 = vpack.c.bf16 %v2888_v17, %v2888_v17 }
 0x291   :  { %3200 = vmatmul.bf16.vlgmr.msrb.gmra.mxu0 %v2892_v27 }
 0x2d3   :  { %v3162_v20 = vpop.f32.mrf.mxu3 }
 0x2d4   :  { %v3163_v26 = vadd.f32 %v5023_v7, %v3162_v20 }
 0x2db   :  { %v3164_v57 = vpop.f32.mrf.mxu3 }
 0x2dd   :  { %v3175_v21 = vpop.f32.mrf.mxu1 }
 0x2de   :  { %v3176_v55 = vadd.f32 %v3175_v21, %v3163_v26 }
 0x2e5   :  { %v3177_v23 = vpop.f32.mrf.mxu1 }
 0x2f4   :  { %v3188_v24 = vpop.f32.mrf.mxu2 }
 0x2f5   :  { %v3189_v14 = vadd.f32 %v3188_v24, %v3176_v55 }
 0x2fc   :  { %v3190_v25 = vpop.f32.mrf.mxu2 }
 0x30e   :  { %v3201_v34 = vpop.f32.mrf.mxu0 }
 0x30f   :  { %v3202_v28 = vadd.f32 %v3201_v34, %v3189_v14 }
 0x311   :  { %3205 = vst [vmem:[#allocation14] sm:$0xff] %v3202_v28 }
 0x312   :  { %3216 = dma.vmem_to_hbm [thread:$0]  %s3212_s1, 128, %s3214_s26, [#allocation4]  }
 0x316   :  { %v3203_v29 = vpop.f32.mrf.mxu0 }
 0x317   :  { %5234 = dma.done.wait [#allocation4], 128  }
 0x318   :  { %5235 = vsyncadd [#allocation4], 4294967168 }
 0x319   :  { %3221 = vsyncpa [#allocation3], 1 }
 0x31a   :  { %3222 = vsyncpa [#allocation6], 1 }
 0x31b   :  { %3223 = vsyncpa [#allocation9], 1 }
 0x31c   :  { %3224 = vsyncpa [#allocation12], 1 }
 0x31d   :  { %3225 = vsyncpa [#allocation4], 1 }

</bundles_post_ra>
